<compile_context>
chip_gen: v5e
topology: v5e:2x2
jax: 0.10.0
libtpu: 0.0.40
codegen_flags: <defaults>
</compile_context>

<pallas_src>
import functools

import jax
import jax.numpy as jnp
from jax import lax
from jax.experimental import pallas as pl
from jax.experimental.pallas import tpu as pltpu

NUM_LABELS = 56
PAD_LABELS = 128   # lane-dense padding of the label/logit dimension
HIDDEN = 1024      # ViT-Large pooler_output width (fc_1 input)
FC1_OUT = 512
MAX_TILE_B = 128   # upper bound on the batch tile (multiple of 8 sublanes)


def _round_up(x, m):
    return ((x + m - 1) // m) * m


def _head_loss_kernel(x_ref, w1_ref, b1_ref, w2_ref, b2_ref, y_ref,
                      logits_ref, loss_ref, *, batch_actual, tile_b):
    """relu -> fc1 -> relu -> fc2 -> masked BCEWithLogits(sum) for one batch tile.

    x_ref:      [tile_b, 1024] bf16 pooler_output tile (rows >= batch_actual pad)
    w1_ref:     [1024, 512] bf16,  b1_ref: [1, 512] f32
    w2_ref:     [512, 128]  bf16 (cols 56..127 zero), b2_ref: [1, 128] f32
    y_ref:      [tile_b, 128] f32 multi-hot labels (padded cols/rows are zero)
    logits_ref: [tile_b, 128] f32 (valid region = [:batch_actual, :56])
    loss_ref:   [1, 1] f32 in SMEM — partial BCE sum for this tile
    """
    # relu_1 (dropout_1 = identity in eval mode); bf16 elementwise (exact for relu).
    x = jnp.maximum(x_ref[...], 0)

    # fc_1: bf16 MXU operands, f32 accumulation; bias add + relu_2 in f32.
    h = jnp.dot(x, w1_ref[...], preferred_element_type=jnp.float32) + b1_ref[...]
    h = jnp.maximum(h, 0.0)

    # fc_2 (dropout_2 = identity), lane-padded to 128 output columns.
    z = jnp.dot(h.astype(jnp.bfloat16), w2_ref[...],
                preferred_element_type=jnp.float32) + b2_ref[...]
    logits_ref[...] = z

    # binary_cross_entropy_with_logits, reduction='sum'
    # stable form: max(z, 0) - z*y + log1p(exp(-|z|)); exp/log1p run on the EUP.
    y = y_ref[...]
    per_elem = jnp.maximum(z, 0.0) - z * y + jnp.log1p(jnp.exp(-jnp.abs(z)))

    # Mask out padded rows (>= batch_actual) and padded label columns (>= 56).
    row = pl.program_id(0) * tile_b + lax.broadcasted_iota(
        jnp.int32, per_elem.shape, 0)
    col = lax.broadcasted_iota(jnp.int32, per_elem.shape, 1)
    valid = (row < batch_actual) & (col < NUM_LABELS)
    loss_ref[0, 0] = jnp.sum(jnp.where(valid, per_elem, 0.0))


def custom_model_head(pooler_output, labels, w1, b1, w2, b2, *, tile_b=None):
    """Pallas call for the classifier head + loss (batch-tiled, lane-padded)."""
    B = pooler_output.shape[0]
    if tile_b is None:
        tile_b = min(MAX_TILE_B, _round_up(B, 8))     # >= 8 sublanes per MXU pass
    num_tiles = pl.cdiv(B, tile_b)
    b_pad = num_tiles * tile_b

    # Pad batch to the tile size; pad labels/logits lane dim to 128.
    # x is pre-cast to bf16 in the wrapper -> half the activation DMA traffic.
    x_pad = jnp.pad(pooler_output.astype(jnp.bfloat16), ((0, b_pad - B), (0, 0)))
    y_pad = jnp.pad(labels.astype(jnp.float32),
                    ((0, b_pad - B), (0, PAD_LABELS - NUM_LABELS)))

    # Pre-cast MXU weight operands to bf16; zero-pad fc_2 to 128 output cols.
    w1_bf = w1.astype(jnp.bfloat16)
    b1_f = b1.reshape(1, FC1_OUT).astype(jnp.float32)
    w2_pad = jnp.zeros((FC1_OUT, PAD_LABELS), jnp.bfloat16).at[:, :NUM_LABELS].set(
        w2.astype(jnp.bfloat16))
    b2_pad = jnp.zeros((1, PAD_LABELS), jnp.float32).at[:, :NUM_LABELS].set(
        b2.reshape(1, NUM_LABELS).astype(jnp.float32))

    kernel = functools.partial(_head_loss_kernel,
                               batch_actual=B, tile_b=tile_b)

    logits_pad, loss_parts = pl.pallas_call(
        kernel,
        out_shape=(
            jax.ShapeDtypeStruct((b_pad, PAD_LABELS), jnp.float32),   # logits
            jax.ShapeDtypeStruct((num_tiles, 1), jnp.float32),        # partial loss
        ),
        grid=(num_tiles,),
        in_specs=[
            pl.BlockSpec((tile_b, HIDDEN), lambda i: (i, 0)),         # x tile
            pl.BlockSpec((HIDDEN, FC1_OUT), lambda i: (0, 0)),        # w1 (resident)
            pl.BlockSpec((1, FC1_OUT), lambda i: (0, 0)),             # b1 (resident)
            pl.BlockSpec((FC1_OUT, PAD_LABELS), lambda i: (0, 0)),    # w2 (resident)
            pl.BlockSpec((1, PAD_LABELS), lambda i: (0, 0)),          # b2 (resident)
            pl.BlockSpec((tile_b, PAD_LABELS), lambda i: (i, 0)),     # labels tile
        ],
        out_specs=(
            pl.BlockSpec((tile_b, PAD_LABELS), lambda i: (i, 0)),     # logits tile
            pl.BlockSpec((1, 1), lambda i: (i, 0),                    # scalar loss
                         memory_space=pltpu.SMEM),
        ),
        compiler_params=pltpu.CompilerParams(
            dimension_semantics=("parallel",)),
    )(x_pad, w1_bf, b1_f, w2_pad, b2_pad, y_pad)

    logits = logits_pad[:B, :NUM_LABELS]
    loss = jnp.sum(loss_parts)
    return logits, loss


def vit_backbone_stub(pixel_values, w_embed):
    """Deterministic stand-in for the frozen ViT: flatten NCHW pixels, project
    to HIDDEN, tanh (mimicking the ViT pooler tanh). Plain-JAX glue only."""
    B = pixel_values.shape[0]
    flat = pixel_values.reshape(B, -1).astype(jnp.float32)
    pooler = jnp.tanh(flat @ w_embed)
    return pooler


def forward(pixel_values, labels, params):
    pooler_output = vit_backbone_stub(pixel_values, params["w_embed"])
    logits, loss = custom_model_head(
        pooler_output, labels,
        params["w1"], params["b1"], params["w2"], params["b2"],
    )
    # hidden_states from the real ViT are not reproduced (backbone is a stub).
    return {
        "loss": loss,
        "logits": logits,
        "hidden_states": None,
        "pooler_output": pooler_output,
    }


def _reference_head(pooler_output, labels, params):
    """Pure-JAX f32 reference for correctness check of the Pallas kernel."""
    x = jnp.maximum(pooler_output, 0.0)
    h = jnp.maximum(x @ params["w1"] + params["b1"], 0.0)
    z = h @ params["w2"] + params["b2"]
    per = jnp.maximum(z, 0.0) - z * labels + jnp.log1p(jnp.exp(-jnp.abs(z)))
    return z, jnp.sum(per)


if __name__ == "__main__":
    key = jax.random.PRNGKey(0)
    k_px, k_lbl, k_emb, k_w1, k_b1, k_w2, k_b2 = jax.random.split(key, 7)

    # Small, forward-consistent shapes: NCHW pixel_values, multi-hot labels.
    B, C, H, W = 2, 3, 16, 16
    pixel_values = jax.random.normal(k_px, (B, C, H, W), dtype=jnp.float32)
    labels = jax.random.bernoulli(k_lbl, 0.5, (B, NUM_LABELS)).astype(jnp.float32)

    in_feat = C * H * W
    params = {
        "w_embed": 0.02 * jax.random.normal(k_emb, (in_feat, HIDDEN), jnp.float32),
        "w1": 0.02 * jax.random.normal(k_w1, (HIDDEN, FC1_OUT), jnp.float32),
        "b1": 0.01 * jax.random.normal(k_b1, (1, FC1_OUT), jnp.float32),
        "w2": 0.02 * jax.random.normal(k_w2, (FC1_OUT, NUM_LABELS), jnp.float32),
        "b2": 0.01 * jax.random.normal(k_b2, (1, NUM_LABELS), jnp.float32),
    }

    out = forward(pixel_values, labels, params)
    jax.block_until_ready(out["loss"])
    jax.block_until_ready(out["logits"])

    # Verify Pallas kernel against the pure-JAX f32 reference.
    # Tolerances loosened because the kernel uses bf16 MXU operands (f32 accum).
    ref_logits, ref_loss = _reference_head(out["pooler_output"], labels, params)
    assert out["logits"].shape == (B, NUM_LABELS)
    assert jnp.allclose(out["logits"], ref_logits, atol=1e-2, rtol=5e-2)
    assert jnp.allclose(out["loss"], ref_loss, atol=0.5, rtol=1e-2)

    print("KERNEL_OK")
</pallas_src>

<mosaic_0001>
module attributes {stable_mosaic.version = 11 : i64} {
  func.func @_head_loss_kernel(%arg0: i32, %arg1: memref<8x1024xbf16, #tpu.memory_space<vmem>>, %arg2: memref<1024x512xbf16, #tpu.memory_space<vmem>>, %arg3: memref<1x512xf32, #tpu.memory_space<vmem>>, %arg4: memref<512x128xbf16, #tpu.memory_space<vmem>>, %arg5: memref<1x128xf32, #tpu.memory_space<vmem>>, %arg6: memref<8x128xf32, #tpu.memory_space<vmem>>, %arg7: memref<8x128xf32, #tpu.memory_space<vmem>>, %arg8: memref<1x1xf32, #tpu.memory_space<smem>>) attributes {dimension_semantics = [#tpu.dimension_semantics<parallel>], iteration_bounds = array<i64: 1>, scalar_prefetch = 0 : i64, scratch_operands = 0 : i64, tpu.core_type = #tpu.core_type<tc>, window_params = [{transform_indices = @transform_0, window_bounds = array<i64: 8, 1024>}, {pipeline_mode = #tpu.pipeline_mode<synchronous>, transform_indices = @transform_1, window_bounds = array<i64: 1024, 512>}, {pipeline_mode = #tpu.pipeline_mode<synchronous>, transform_indices = @transform_2, window_bounds = array<i64: 1, 512>}, {pipeline_mode = #tpu.pipeline_mode<synchronous>, transform_indices = @transform_3, window_bounds = array<i64: 512, 128>}, {pipeline_mode = #tpu.pipeline_mode<synchronous>, transform_indices = @transform_4, window_bounds = array<i64: 1, 128>}, {transform_indices = @transform_5, window_bounds = array<i64: 8, 128>}, {transform_indices = @transform_6, window_bounds = array<i64: 8, 128>}, {transform_indices = @transform_7, window_bounds = array<i64: 1, 1>}]} {
    %c0 = arith.constant 0 : index
    %c0_0 = arith.constant 0 : index
    %0 = vector.load %arg1[%c0, %c0_0] : memref<8x1024xbf16, #tpu.memory_space<vmem>>, vector<8x1024xbf16>
    %cst = arith.constant 0.000000e+00 : bf16
    %1 = vector.broadcast %cst : bf16 to vector<8x1024xbf16>
    %2 = arith.maximumf %0, %1 : vector<8x1024xbf16>
    %c0_1 = arith.constant 0 : index
    %c0_2 = arith.constant 0 : index
    %3 = vector.load %arg2[%c0_1, %c0_2] : memref<1024x512xbf16, #tpu.memory_space<vmem>>, vector<1024x512xbf16>
    %cst_3 = arith.constant dense<0.000000e+00> : vector<8x512xf32>
    %4 = tpu.matmul %2, %3, %cst_3 {dimension_numbers = #tpu.dot_dimension_numbers<[1], [0], [0], [1], [0, 0, 1, 1], [], []>} : vector<8x1024xbf16>, vector<1024x512xbf16>, vector<8x512xf32> -> vector<8x512xf32>
    %c0_4 = arith.constant 0 : index
    %c0_5 = arith.constant 0 : index
    %5 = vector.load %arg3[%c0_4, %c0_5] : memref<1x512xf32, #tpu.memory_space<vmem>>, vector<1x512xf32>
    %6 = vector.broadcast %5 : vector<1x512xf32> to vector<8x512xf32>
    %7 = arith.addf %4, %6 : vector<8x512xf32>
    %cst_6 = arith.constant 0.000000e+00 : f32
    %8 = vector.broadcast %cst_6 : f32 to vector<8x512xf32>
    %9 = arith.maximumf %7, %8 : vector<8x512xf32>
    %10 = arith.truncf %9 : vector<8x512xf32> to vector<8x512xbf16>
    %c0_7 = arith.constant 0 : index
    %c0_8 = arith.constant 0 : index
    %11 = vector.load %arg4[%c0_7, %c0_8] : memref<512x128xbf16, #tpu.memory_space<vmem>>, vector<512x128xbf16>
    %cst_9 = arith.constant dense<0.000000e+00> : vector<8x128xf32>
    %12 = tpu.matmul %10, %11, %cst_9 {dimension_numbers = #tpu.dot_dimension_numbers<[1], [0], [0], [1], [0, 0, 1, 1], [], []>} : vector<8x512xbf16>, vector<512x128xbf16>, vector<8x128xf32> -> vector<8x128xf32>
    %c0_10 = arith.constant 0 : index
    %c0_11 = arith.constant 0 : index
    %13 = vector.load %arg5[%c0_10, %c0_11] : memref<1x128xf32, #tpu.memory_space<vmem>>, vector<1x128xf32>
    %14 = vector.broadcast %13 : vector<1x128xf32> to vector<8x128xf32>
    %15 = arith.addf %12, %14 : vector<8x128xf32>
    %c0_12 = arith.constant 0 : index
    %c0_13 = arith.constant 0 : index
    %16 = vector.load %arg7[%c0_12, %c0_13] : memref<8x128xf32, #tpu.memory_space<vmem>>, vector<8x128xf32>
    tpu.vector_store %arg7[%c0_12, %c0_13], %15 {strides = array<i32>} : memref<8x128xf32, #tpu.memory_space<vmem>>, vector<8x128xf32>,
    %c0_14 = arith.constant 0 : index
    %c0_15 = arith.constant 0 : index
    %17 = vector.load %arg6[%c0_14, %c0_15] : memref<8x128xf32, #tpu.memory_space<vmem>>, vector<8x128xf32>
    %cst_16 = arith.constant 0.000000e+00 : f32
    %18 = vector.broadcast %cst_16 : f32 to vector<8x128xf32>
    %19 = arith.maximumf %15, %18 : vector<8x128xf32>
    %20 = arith.mulf %15, %17 : vector<8x128xf32>
    %21 = arith.subf %19, %20 : vector<8x128xf32>
    %22 = math.absf %15 : vector<8x128xf32>
    %cst_17 = arith.constant 0.000000e+00 : f32
    %23 = vector.broadcast %cst_17 : f32 to vector<8x128xf32>
    %24 = arith.subf %23, %22 : vector<8x128xf32>
    %25 = math.exp %24 : vector<8x128xf32>
    %26 = math.log1p %25 : vector<8x128xf32>
    %27 = arith.addf %21, %26 : vector<8x128xf32>
    %c8_i32 = arith.constant 8 : i32
    %28 = arith.muli %arg0, %c8_i32 : i32
    %29 = tpu.iota {dimensions = array<i32: 0>} : vector<8x128xi32>
    %30 = vector.broadcast %28 : i32 to vector<8x128xi32>
    %31 = arith.addi %30, %29 : vector<8x128xi32>
    %32 = tpu.iota {dimensions = array<i32: 1>} : vector<8x128xi32>
    %c2_i32 = arith.constant 2 : i32
    %33 = vector.broadcast %c2_i32 : i32 to vector<8x128xi32>
    %34 = arith.cmpi slt, %31, %33 : vector<8x128xi32>
    %c56_i32 = arith.constant 56 : i32
    %35 = vector.broadcast %c56_i32 : i32 to vector<8x128xi32>
    %36 = arith.cmpi slt, %32, %35 : vector<8x128xi32>
    %37 = arith.andi %34, %36 : vector<8x128xi1>
    %cst_18 = arith.constant 0.000000e+00 : f32
    %38 = vector.broadcast %cst_18 : f32 to vector<8x128xf32>
    %39 = arith.select %37, %27, %38 : vector<8x128xi1>, vector<8x128xf32>
    %40 = vector.shape_cast %39 : vector<8x128xf32> to vector<1x8x128xf32>
    %cst_19 = arith.constant dense<0.000000e+00> : vector<1xf32>
    %41 = vector.multi_reduction <add>, %40, %cst_19 [1, 2] : vector<1x8x128xf32> to vector<1xf32>
    %42 = vector.shape_cast %41 : vector<1xf32> to vector<1x1x1xf32>
    %43 = vector.extract %42[0, 0, 0] : f32 from vector<1x1x1xf32>
    %c0_20 = arith.constant 0 : index
    %c0_21 = arith.constant 0 : index
    %44 = memref.load %arg8[%c0_20, %c0_21] : memref<1x1xf32, #tpu.memory_space<smem>>
    memref.store %43, %arg8[%c0_20, %c0_21] : memref<1x1xf32, #tpu.memory_space<smem>>
    return
  }
  func.func @transform_0(%arg0: i32) -> (i32, i32) {
    %c0_i32 = arith.constant 0 : i32
    %c0_i32_0 = arith.constant 0 : i32
    return %arg0, %c0_i32 : i32, i32
  }
  func.func @transform_1(%arg0: i32) -> (i32, i32) {
    %c0_i32 = arith.constant 0 : i32
    %c0_i32_0 = arith.constant 0 : i32
    %c0_i32_1 = arith.constant 0 : i32
    return %c0_i32, %c0_i32_0 : i32, i32
  }
  func.func @transform_2(%arg0: i32) -> (i32, i32) {
    %c0_i32 = arith.constant 0 : i32
    %c0_i32_0 = arith.constant 0 : i32
    %c0_i32_1 = arith.constant 0 : i32
    return %c0_i32, %c0_i32_0 : i32, i32
  }
  func.func @transform_3(%arg0: i32) -> (i32, i32) {
    %c0_i32 = arith.constant 0 : i32
    %c0_i32_0 = arith.constant 0 : i32
    %c0_i32_1 = arith.constant 0 : i32
    return %c0_i32, %c0_i32_0 : i32, i32
  }
  func.func @transform_4(%arg0: i32) -> (i32, i32) {
    %c0_i32 = arith.constant 0 : i32
    %c0_i32_0 = arith.constant 0 : i32
    %c0_i32_1 = arith.constant 0 : i32
    return %c0_i32, %c0_i32_0 : i32, i32
  }
  func.func @transform_5(%arg0: i32) -> (i32, i32) {
    %c0_i32 = arith.constant 0 : i32
    %c0_i32_0 = arith.constant 0 : i32
    return %arg0, %c0_i32 : i32, i32
  }
  func.func @transform_6(%arg0: i32) -> (i32, i32) {
    %c0_i32 = arith.constant 0 : i32
    %c0_i32_0 = arith.constant 0 : i32
    return %arg0, %c0_i32 : i32, i32
  }
  func.func @transform_7(%arg0: i32) -> (i32, i32) {
    %c0_i32 = arith.constant 0 : i32
    %c0_i32_0 = arith.constant 0 : i32
    return %arg0, %c0_i32 : i32, i32
  }
}

</mosaic_0001>

<bundles_post_ra>
// kernel: tpu_custom_call.1
= control target key start
LH: loop header
LB: loop body
LE: loop exit
PB: predicated region body
PF: predicated region fallthrough
CT: control target
= control target key end

     0   :  { %13 = vsyncpa [#allocation3], 0  ;;  %s4255_s0 = inlined_call_operand.hbm [shape: bf16[8,1024], index: 0, kind: input, shape index: {}]   ;;  %s4256_s1 = inlined_call_operand.hbm [shape: bf16[1024,512], index: 1, kind: input, shape index: {}]   ;;  %s4257_s2 = inlined_call_operand.hbm [shape: f32[1,512], index: 2, kind: input, shape index: {}]   ;;  %s4258_s3 = inlined_call_operand.hbm [shape: bf16[512,128], index: 3, kind: input, shape index: {}]   ;;  %s4259_s4 = inlined_call_operand.vmem [shape: f32[1,128], index: 4, kind: input, shape index: {}]   ;;  %s4260_s5 = inlined_call_operand.hbm [shape: f32[8,128], index: 5, kind: input, shape index: {}]   ;;  %s4261_s6 = inlined_call_operand.hbm [shape: f32[8,128], index: 6, kind: output, shape index: {0}]   ;;  %s4262_s7 = inlined_call_operand.hbm [shape: f32[1,1], index: 7, kind: output, shape index: {1}]  }
   0x1   :  { %14 = vsyncpa [#allocation7], 0 }
   0x2   :  { %15 = vsyncpa [#allocation10], 0 }
   0x3   :  { %16 = vsyncpa [#allocation4], 0  ;;  %s33_s26 = sshll.u32 %s4256_s1, 4  ;;  %s34_s26 = int_to_ptr.hbm [resolvable:$true] %s33_s26 }
   0x4   :  { %17 = vsyncpa [#allocation5], 0  ;;  %s4108_s27 = smov [#allocation6]   ;;  %s57_s8 = sshll.u32 %s4258_s3, 4  ;;  %s58_s8 = int_to_ptr.hbm [resolvable:$true] %s57_s8 }
   0x5   :  { %s35_s28 = sshll.u32 %s4108_s27, 4  ;;  %s4109_s9 = smov 256   ;;  %s36_s28 = int_to_ptr.vmem [resolvable:$true] %s35_s28 }
   0x6   :  { %s4110_s10 = smov 16   ;;  %s4111_s11 = smov [#allocation9]  }
   0x7   :  { %41 = dma.hbm_to_vmem [thread:$0]  %s34_s26, 32768, %s36_s28, [#allocation7], %s4109_s9, %s4109_s9, %s4110_s10  }
   0x8   :  { %s59_s12 = sshll.u32 %s4111_s11, 4  ;;  %s4112_s13 = smov 64   ;;  %s60_s12 = int_to_ptr.vmem [resolvable:$true] %s59_s12 }
   0x9   :  { %s4113_s14 = smov 4   ;;  %s23_s16 = sshll.u32 %s4255_s0, 4  ;;  %s24_s16 = int_to_ptr.hbm [resolvable:$true] %s23_s16 }
   0xa   :  { %65 = dma.hbm_to_vmem [thread:$0]  %s58_s8, 4096, %s60_s12, [#allocation10], %s4112_s13, %s4112_s13, %s4113_s14  }
   0xb   :  { %s4114_s17 = smov [#allocation2]   ;;  %s47_s20 = sshll.u32 %s4257_s2, 4  ;;  %s48_s20 = int_to_ptr.hbm [resolvable:$true] %s47_s20 }
   0xc   :  { %s25_s18 = sshll.u32 %s4114_s17, 4  ;;  %s4115_s21 = smov [#allocation8]   ;;  %s26_s18 = int_to_ptr.vmem [resolvable:$true] %s25_s18 }
   0xd   :  { %28 = dma.hbm_to_vmem [thread:$0]  %s24_s16, 512, %s26_s18, [#allocation3]  }
   0xe   :  { %s49_s22 = sshll.u32 %s4115_s21, 4  ;;  %s73_s25 = sshll.u32 %s4260_s5, 4  ;;  %s50_s22 = int_to_ptr.vmem [resolvable:$true] %s49_s22  ;;  %s74_s25 = int_to_ptr.hbm [resolvable:$true] %s73_s25 }
   0xf   :  { %52 = dma.hbm_to_vmem [thread:$0]  %s48_s20, 64, %s50_s22, [#allocation7]  }
  0x10   :  { %s4116_s0 = smov [#allocation11]  }
  0x11   :  { %s75_s26 = sshll.u32 %s4116_s0, 4  ;;  %s76_s26 = int_to_ptr.vmem [resolvable:$true] %s75_s26 }
  0x12   :  { %78 = dma.hbm_to_vmem [thread:$0]  %s74_s25, 128, %s76_s26, [#allocation10]  }
  0x13   :  { %4098 = dma.done.wait [#allocation3], 512  }
  0x14   :  { %4099 = vsyncadd [#allocation3], 4294966784 }
  0x15   :  { %4100 = dma.done.wait [#allocation7], 32832  }
  0x16   :  { %4101 = vsyncadd [#allocation7], 4294934464 }
  0x17   :  { %4102 = dma.done.wait [#allocation10], 4224  }
  0x18   :  { %4103 = vsyncadd [#allocation10], 4294963072  ;;  %v2598_v0 = vld [vmem:[#allocation6 + $0xe0] sm:$0xf]  ;;  %v3666_v1 = vld [vmem:[#allocation6 + $0xec] sm:$0xf0] }
  0x19   :  { %v2726_v2 = vld [vmem:[#allocation6 + $0x1e0] sm:$0xf]  ;;  %v2599_v3 = vor.u32 %v3666_v1, %v2598_v0  ;;  %v3698_v4 = vld [vmem:[#allocation6 + $0x1ec] sm:$0xf0]  ;;  %s2457_s30 = sshll.u32 %s4261_s6, 4  ;;  %s2466_s10 = sshll.u32 %s4262_s7, 4  ;;  %s2458_s30 = int_to_ptr.hbm [resolvable:$true] %s2457_s30  ;;  %s2467_s10 = int_to_ptr.hbm [resolvable:$true] %s2466_s10 }
  0x1a   :  { %v2854_v5 = vld [vmem:[#allocation6 + $0x2e0] sm:$0xf]  ;;  %v3730_v6 = vld [vmem:[#allocation6 + $0x2ec] sm:$0xf0]  ;;  %v2727_v7 = vor.u32 %v3698_v4, %v2726_v2  ;;  %s4118_s12 = smov [#allocation13]  }
  0x1b   :  { %v2855_v8 = vor.u32 %v3730_v6, %v2854_v5  ;;  %v2982_v9 = vld [vmem:[#allocation6 + $0x3e0] sm:$0xf]  ;;  %v3762_v10 = vld [vmem:[#allocation6 + $0x3ec] sm:$0xf0]  ;;  %1673 = vmatpush.bf16.msra.mxu0 %v2599_v3 }
  0x1c   :  { %v2582_v11 = vld [vmem:[#allocation6 + $0xc0] sm:$0xf]  ;;  %v2983_v12 = vor.u32 %v3762_v10, %v2982_v9  ;;  %v3662_v13 = vld [vmem:[#allocation6 + $0xcc] sm:$0xf0]  ;;  %1686 = vmatpush.bf16.msra.mxu1 %v2727_v7 }
  0x1d   :  { %v2710_v14 = vld [vmem:[#allocation6 + $0x1c0] sm:$0xf]  ;;  %v3694_v15 = vld [vmem:[#allocation6 + $0x1cc] sm:$0xf0]  ;;  %1699 = vmatpush.bf16.msra.mxu2 %v2855_v8  ;;  %v2583_v16 = vor.u32 %v3662_v13, %v2582_v11 }
  0x1e   :  { %v2711_v17 = vor.u32 %v3694_v15, %v2710_v14  ;;  %v2838_v18 = vld [vmem:[#allocation6 + $0x2c0] sm:$0xf]  ;;  %v3726_v19 = vld [vmem:[#allocation6 + $0x2cc] sm:$0xf0]  ;;  %1712 = vmatpush.bf16.msra.mxu3 %v2983_v12 }
  0x1f   :  { %v2966_v20 = vld [vmem:[#allocation6 + $0x3c0] sm:$0xf]  ;;  %v2839_v21 = vor.u32 %v3726_v19, %v2838_v18  ;;  %v3758_v22 = vld [vmem:[#allocation6 + $0x3cc] sm:$0xf0]  ;;  %1674 = vmatpush.bf16.msra.mxu0 %v2583_v16 }
  0x20   :  { %v2566_v23 = vld [vmem:[#allocation6 + $0xa0] sm:$0xf]  ;;  %v3658_v24 = vld [vmem:[#allocation6 + $0xac] sm:$0xf0]  ;;  %v2967_v25 = vor.u32 %v3758_v22, %v2966_v20  ;;  %1687 = vmatpush.bf16.msra.mxu1 %v2711_v17 }
  0x21   :  { %v2694_v26 = vld [vmem:[#allocation6 + $0x1a0] sm:$0xf]  ;;  %v3690_v27 = vld [vmem:[#allocation6 + $0x1ac] sm:$0xf0]  ;;  %v2567_v29 = vor.u32 %v3658_v24, %v2566_v23  ;;  %1700 = vmatpush.bf16.msra.mxu2 %v2839_v21 }
  0x22   :  { %v2822_v28 = vld [vmem:[#allocation6 + $0x2a0] sm:$0xf]  ;;  %v3722_v30 = vld [vmem:[#allocation6 + $0x2ac] sm:$0xf0]  ;;  %v2695_v33 = vor.u32 %v3690_v27, %v2694_v26  ;;  %1713 = vmatpush.bf16.msra.mxu3 %v2967_v25 }
  0x23   :  { %v2950_v31 = vld [vmem:[#allocation6 + $0x3a0] sm:$0xf]  ;;  %v3754_v32 = vld [vmem:[#allocation6 + $0x3ac] sm:$0xf0]  ;;  %v2823_v34 = vor.u32 %v3722_v30, %v2822_v28  ;;  %1675 = vmatpush.bf16.msra.mxu0 %v2567_v29 }
  0x24   :  { %v2550_v35 = vld [vmem:[#allocation6 + $0x80] sm:$0xf]  ;;  %v3654_v36 = vld [vmem:[#allocation6 + $0x8c] sm:$0xf0]  ;;  %v2951_v38 = vor.u32 %v3754_v32, %v2950_v31  ;;  %1688 = vmatpush.bf16.msra.mxu1 %v2695_v33 }
  0x25   :  { %v2678_v37 = vld [vmem:[#allocation6 + $0x180] sm:$0xf]  ;;  %v3686_v39 = vld [vmem:[#allocation6 + $0x18c] sm:$0xf0]  ;;  %v2551_v44 = vor.u32 %v3654_v36, %v2550_v35  ;;  %1701 = vmatpush.bf16.msra.mxu2 %v2823_v34 }
  0x26   :  { %v2806_v40 = vld [vmem:[#allocation6 + $0x280] sm:$0xf]  ;;  %v3718_v41 = vld [vmem:[#allocation6 + $0x28c] sm:$0xf0]  ;;  %v2679_v45 = vor.u32 %v3686_v39, %v2678_v37  ;;  %1714 = vmatpush.bf16.msra.mxu3 %v2951_v38 }
  0x27   :  { %v2934_v42 = vld [vmem:[#allocation6 + $0x380] sm:$0xf]  ;;  %v3750_v43 = vld [vmem:[#allocation6 + $0x38c] sm:$0xf0]  ;;  %v2807_v46 = vor.u32 %v3718_v41, %v2806_v40  ;;  %1676 = vmatpush.bf16.msra.mxu0 %v2551_v44 }
  0x28   :  { %v2534_v47 = vld [vmem:[#allocation6 + $0x60] sm:$0xf]  ;;  %v3650_v48 = vld [vmem:[#allocation6 + $0x6c] sm:$0xf0]  ;;  %v2935_v50 = vor.u32 %v3750_v43, %v2934_v42  ;;  %1689 = vmatpush.bf16.msra.mxu1 %v2679_v45 }
  0x29   :  { %v2662_v49 = vld [vmem:[#allocation6 + $0x160] sm:$0xf]  ;;  %v3682_v51 = vld [vmem:[#allocation6 + $0x16c] sm:$0xf0]  ;;  %v2535_v56 = vor.u32 %v3650_v48, %v2534_v47  ;;  %1702 = vmatpush.bf16.msra.mxu2 %v2807_v46 }
  0x2a   :  { %v2790_v52 = vld [vmem:[#allocation6 + $0x260] sm:$0xf]  ;;  %v3714_v53 = vld [vmem:[#allocation6 + $0x26c] sm:$0xf0]  ;;  %v2663_v57 = vor.u32 %v3682_v51, %v2662_v49  ;;  %1715 = vmatpush.bf16.msra.mxu3 %v2935_v50 }
  0x2b   :  { %v2918_v54 = vld [vmem:[#allocation6 + $0x360] sm:$0xf]  ;;  %v3746_v55 = vld [vmem:[#allocation6 + $0x36c] sm:$0xf0]  ;;  %v2791_v58 = vor.u32 %v3714_v53, %v2790_v52  ;;  %1677 = vmatpush.bf16.msra.mxu0 %v2535_v56 }
  0x2c   :  { %v2518_v59 = vld [vmem:[#allocation6 + $0x40] sm:$0xf]  ;;  %v3646_v60 = vld [vmem:[#allocation6 + $0x4c] sm:$0xf0]  ;;  %v2919_v62 = vor.u32 %v3746_v55, %v2918_v54  ;;  %1690 = vmatpush.bf16.msra.mxu1 %v2663_v57 }
  0x2d   :  { %v2646_v61 = vld [vmem:[#allocation6 + $0x140] sm:$0xf]  ;;  %v3678_v63 = vld [vmem:[#allocation6 + $0x14c] sm:$0xf0]  ;;  %v2519_v4 = vor.u32 %v3646_v60, %v2518_v59  ;;  %1703 = vmatpush.bf16.msra.mxu2 %v2791_v58 }
  0x2e   :  { %v2774_v0 = vld [vmem:[#allocation6 + $0x240] sm:$0xf]  ;;  %v3710_v1 = vld [vmem:[#allocation6 + $0x24c] sm:$0xf0]  ;;  %v2647_v5 = vor.u32 %v3678_v63, %v2646_v61  ;;  %1716 = vmatpush.bf16.msra.mxu3 %v2919_v62 }
  0x2f   :  { %v2902_v2 = vld [vmem:[#allocation6 + $0x340] sm:$0xf]  ;;  %v3742_v3 = vld [vmem:[#allocation6 + $0x34c] sm:$0xf0]  ;;  %v2775_v6 = vor.u32 %v3710_v1, %v2774_v0  ;;  %1678 = vmatpush.bf16.msra.mxu0 %v2519_v4 }
  0x30   :  { %v2502_v7 = vld [vmem:[#allocation6 + $0x20] sm:$0xf]  ;;  %v3642_v8 = vld [vmem:[#allocation6 + $0x2c] sm:$0xf0]  ;;  %v2903_v10 = vor.u32 %v3742_v3, %v2902_v2  ;;  %1691 = vmatpush.bf16.msra.mxu1 %v2647_v5  ;;  %v100_v5 = vld [vmem:[#allocation2 + $0x8] sm:$0xff] }
  0x31   :  { %v2630_v9 = vld [vmem:[#allocation6 + $0x120] sm:$0xf]  ;;  %v3674_v11 = vld [vmem:[#allocation6 + $0x12c] sm:$0xf0]  ;;  %v2503_v16 = vor.u32 %v3642_v8, %v2502_v7  ;;  %1704 = vmatpush.bf16.msra.mxu2 %v2775_v6 }
  0x32   :  { %v2758_v12 = vld [vmem:[#allocation6 + $0x220] sm:$0xf]  ;;  %v3706_v13 = vld [vmem:[#allocation6 + $0x22c] sm:$0xf0]  ;;  %v2631_v19 = vor.u32 %v3674_v11, %v2630_v9  ;;  %1717 = vmatpush.bf16.msra.mxu3 %v2903_v10  ;;  %v105_v11 = vunpack.c.l.bf16 %v100_v5 }
  0x33   :  { %v2886_v14 = vld [vmem:[#allocation6 + $0x320] sm:$0xf]  ;;  %v3738_v15 = vld [vmem:[#allocation6 + $0x32c] sm:$0xf0]  ;;  %v2759_v20 = vor.u32 %v3706_v13, %v2758_v12  ;;  %1679 = vmatpush.bf16.msra.mxu0 %v2503_v16  ;;  %v106_v13 = vunpack.c.h.bf16 %v100_v5 }
  0x34   :  { %v2486_v17 = vld [vmem:[#allocation6] sm:$0xf]  ;;  %v3638_v18 = vld [vmem:[#allocation6 + $0xc] sm:$0xf0]  ;;  %v2887_v24 = vor.u32 %v3738_v15, %v2886_v14  ;;  %1692 = vmatpush.bf16.msra.mxu1 %v2631_v19 }
  0x35   :  { %v2614_v21 = vld [vmem:[#allocation6 + $0x100] sm:$0xf]  ;;  %v3670_v22 = vld [vmem:[#allocation6 + $0x10c] sm:$0xf0]  ;;  %v2487_v31 = vor.u32 %v3638_v18, %v2486_v17  ;;  %1705 = vmatpush.bf16.msra.mxu2 %v2759_v20  ;;  %v113_v18 = vmax.f32 %v105_v11, 0.0  ;;  %v114_v20 = vmax.f32 %v106_v13, 0.0 }
  0x36   :  { %v2742_v23 = vld [vmem:[#allocation6 + $0x200] sm:$0xf]  ;;  %v3702_v25 = vld [vmem:[#allocation6 + $0x20c] sm:$0xf0]  ;;  %v2615_v35 = vor.u32 %v3670_v22, %v2614_v21  ;;  %1718 = vmatpush.bf16.msra.mxu3 %v2887_v24 }
  0x37   :  { %v2870_v26 = vld [vmem:[#allocation6 + $0x300] sm:$0xf]  ;;  %v3734_v27 = vld [vmem:[#allocation6 + $0x30c] sm:$0xf0]  ;;  %v2743_v36 = vor.u32 %v3702_v25, %v2742_v23  ;;  %1680 = vmatpush.bf16.msra.mxu0 %v2487_v31 }
  0x38   :  { %v3110_v28 = vld [vmem:[#allocation6 + $0x4e0] sm:$0xf]  ;;  %v3794_v29 = vld [vmem:[#allocation6 + $0x4ec] sm:$0xf0]  ;;  %v2871_v39 = vor.u32 %v3734_v27, %v2870_v26  ;;  %1693 = vmatpush.bf16.msra.mxu1 %v2615_v35 }
  0x39   :  { %v3238_v30 = vld [vmem:[#allocation6 + $0x5e0] sm:$0xf]  ;;  %v3826_v32 = vld [vmem:[#allocation6 + $0x5ec] sm:$0xf0]  ;;  %v3111_v40 = vor.u32 %v3794_v29, %v3110_v28  ;;  %1706 = vmatpush.bf16.msra.mxu2 %v2743_v36  ;;  %v4174_v28 = vpack.c.bf16 %v113_v18, %v113_v18  ;;  %v3696_v18 = vld [vmem:[#allocation6 + $0x1e4] sm:$0xf] }
  0x3a   :  { %v3366_v33 = vld [vmem:[#allocation6 + $0x6e0] sm:$0xf]  ;;  %v3858_v34 = vld [vmem:[#allocation6 + $0x6ec] sm:$0xf0]  ;;  %v3239_v41 = vor.u32 %v3826_v32, %v3238_v30  ;;  %1719 = vmatpush.bf16.msra.mxu3 %v2871_v39  ;;  %v4178_v30 = vpack.c.bf16 %v114_v20, %v114_v20 }
  0x3b   :  { %v3494_v37 = vld [vmem:[#allocation6 + $0x7e0] sm:$0xf]  ;;  %v3890_v38 = vld [vmem:[#allocation6 + $0x7ec] sm:$0xf0]  ;;  %v3367_v42 = vor.u32 %v3858_v34, %v3366_v33  ;;  %1725 = vmatpush.bf16.msrb.mxu0 %v3111_v40 }
  0x3c   :  { %v3094_v43 = vld [vmem:[#allocation6 + $0x4c0] sm:$0xf]  ;;  %v3790_v44 = vld [vmem:[#allocation6 + $0x4cc] sm:$0xf0]  ;;  %v3495_v46 = vor.u32 %v3890_v38, %v3494_v37  ;;  %1738 = vmatpush.bf16.msrb.mxu1 %v3239_v41  ;;  %1707 = vmatmul.bf16.vlgmr.msra.gmra.mxu2 %v4174_v28 }
  0x3d   :  { %v3222_v45 = vld [vmem:[#allocation6 + $0x5c0] sm:$0xf]  ;;  %v3822_v47 = vld [vmem:[#allocation6 + $0x5cc] sm:$0xf0]  ;;  %v3095_v52 = vor.u32 %v3790_v44, %v3094_v43  ;;  %1751 = vmatpush.bf16.msrb.mxu2 %v3367_v42  ;;  %1720 = vmatmul.bf16.vlgmr.msra.gmra.mxu3 %v4178_v30 }
  0x3e   :  { %v3350_v48 = vld [vmem:[#allocation6 + $0x6c0] sm:$0xf]  ;;  %v3854_v49 = vld [vmem:[#allocation6 + $0x6cc] sm:$0xf0]  ;;  %v3223_v54 = vor.u32 %v3822_v47, %v3222_v45  ;;  %1764 = vmatpush.bf16.msrb.mxu3 %v3495_v46 }
  0x3f   :  { %v3478_v50 = vld [vmem:[#allocation6 + $0x7c0] sm:$0xf]  ;;  %v3886_v51 = vld [vmem:[#allocation6 + $0x7cc] sm:$0xf0]  ;;  %v3351_v55 = vor.u32 %v3854_v49, %v3350_v48  ;;  %1726 = vmatpush.bf16.msrb.mxu0 %v3095_v52 }
  0x40   :  { %v3078_v53 = vld [vmem:[#allocation6 + $0x4a0] sm:$0xf]  ;;  %v3786_v56 = vld [vmem:[#allocation6 + $0x4ac] sm:$0xf0]  ;;  %v3479_v59 = vor.u32 %v3886_v51, %v3478_v50  ;;  %1739 = vmatpush.bf16.msrb.mxu1 %v3223_v54 }
  0x41   :  { %v3206_v57 = vld [vmem:[#allocation6 + $0x5a0] sm:$0xf]  ;;  %v3818_v58 = vld [vmem:[#allocation6 + $0x5ac] sm:$0xf0]  ;;  %v3079_v2 = vor.u32 %v3786_v56, %v3078_v53  ;;  %1752 = vmatpush.bf16.msrb.mxu2 %v3351_v55 }
  0x42   :  { %v3334_v60 = vld [vmem:[#allocation6 + $0x6a0] sm:$0xf]  ;;  %v3850_v61 = vld [vmem:[#allocation6 + $0x6ac] sm:$0xf0]  ;;  %v3207_v3 = vor.u32 %v3818_v58, %v3206_v57  ;;  %1765 = vmatpush.bf16.msrb.mxu3 %v3479_v59  ;;  %v102_v57 = vld [vmem:[#allocation2 + $0x18] sm:$0xff] }
  0x43   :  { %v3462_v62 = vld [vmem:[#allocation6 + $0x7a0] sm:$0xf]  ;;  %v3882_v63 = vld [vmem:[#allocation6 + $0x7ac] sm:$0xf0]  ;;  %v3335_v7 = vor.u32 %v3850_v61, %v3334_v60  ;;  %1727 = vmatpush.bf16.msrb.mxu0 %v3079_v2  ;;  %v110_v11 = vunpack.c.h.bf16 %v102_v57 }
  0x44   :  { %v3062_v0 = vld [vmem:[#allocation6 + $0x480] sm:$0xf]  ;;  %v3782_v1 = vld [vmem:[#allocation6 + $0x48c] sm:$0xf0]  ;;  %v3463_v14 = vor.u32 %v3882_v63, %v3462_v62  ;;  %1740 = vmatpush.bf16.msrb.mxu1 %v3207_v3 }
  0x45   :  { %v3190_v4 = vld [vmem:[#allocation6 + $0x580] sm:$0xf]  ;;  %v3814_v8 = vld [vmem:[#allocation6 + $0x58c] sm:$0xf0]  ;;  %v3063_v21 = vor.u32 %v3782_v1, %v3062_v0  ;;  %1753 = vmatpush.bf16.msrb.mxu2 %v3335_v7 }
  0x46   :  { %v99_v6 = vld [vmem:[#allocation2] sm:$0xff]  ;;  %v3846_v10 = vld [vmem:[#allocation6 + $0x68c] sm:$0xf0]  ;;  %v3191_v22 = vor.u32 %v3814_v8, %v3190_v4  ;;  %1766 = vmatpush.bf16.msrb.mxu3 %v3463_v14  ;;  %v109_v4 = vunpack.c.l.bf16 %v102_v57 }
  0x47   :  { %v3318_v9 = vld [vmem:[#allocation6 + $0x680] sm:$0xf]  ;;  %v103_v12 = vunpack.c.l.bf16 %v99_v6  ;;  %v104_v16 = vunpack.c.h.bf16 %v99_v6  ;;  %v3878_v17 = vld [vmem:[#allocation6 + $0x78c] sm:$0xf0]  ;;  %1728 = vmatpush.bf16.msrb.mxu0 %v3063_v21  ;;  %v3728_v21 = vld [vmem:[#allocation6 + $0x2e4] sm:$0xf] }
  0x48   :  { %v3446_v15 = vld [vmem:[#allocation6 + $0x780] sm:$0xf]  ;;  %v3319_v23 = vor.u32 %v3846_v10, %v3318_v9  ;;  %v3778_v26 = vld [vmem:[#allocation6 + $0x46c] sm:$0xf0]  ;;  %1741 = vmatpush.bf16.msrb.mxu1 %v3191_v22  ;;  %v2856_v22 = vld [vmem:[#allocation6 + $0x2f0] sm:$0xf0] }
  0x49   :  { %v111_v19 = vmax.f32 %v103_v12, 0.0  ;;  %v112_v24 = vmax.f32 %v104_v16, 0.0  ;;  %v3046_v25 = vld [vmem:[#allocation6 + $0x460] sm:$0xf]  ;;  %v3447_v31 = vor.u32 %v3878_v17, %v3446_v15  ;;  %v3810_v32 = vld [vmem:[#allocation6 + $0x56c] sm:$0xf0] }
  0x4a   :  { %v3174_v27 = vld [vmem:[#allocation6 + $0x560] sm:$0xf]  ;;  %v3842_v34 = vld [vmem:[#allocation6 + $0x66c] sm:$0xf0]  ;;  %v3047_v38 = vor.u32 %v3778_v26, %v3046_v25  ;;  %1754 = vmatpush.bf16.msrb.mxu2 %v3319_v23  ;;  %v3664_v15 = vld [vmem:[#allocation6 + $0xe4] sm:$0xf] }
  0x4b   :  { %v4176_v29 = vpack.c.bf16 %v111_v19, %v111_v19  ;;  %v3302_v33 = vld [vmem:[#allocation6 + $0x660] sm:$0xf]  ;;  %v4180_v35 = vpack.c.bf16 %v112_v24, %v112_v24  ;;  %v3874_v37 = vld [vmem:[#allocation6 + $0x76c] sm:$0xf0]  ;;  %v3175_v39 = vor.u32 %v3810_v32, %v3174_v27  ;;  %1767 = vmatpush.bf16.msrb.mxu3 %v3447_v31  ;;  %v2600_v17 = vld [vmem:[#allocation6 + $0xf0] sm:$0xf0] }
  0x4c   :  { %v3430_v36 = vld [vmem:[#allocation6 + $0x760] sm:$0xf]  ;;  %v3303_v40 = vor.u32 %v3842_v34, %v3302_v33  ;;  %v3774_v42 = vld [vmem:[#allocation6 + $0x44c] sm:$0xf0]  ;;  %1729 = vmatpush.bf16.msrb.mxu0 %v3047_v38  ;;  %v2728_v19 = vld [vmem:[#allocation6 + $0x1f0] sm:$0xf0]  ;;  %v2603_v34 = vor.u32 %v3664_v15, %v2600_v17  ;;  %v2859_v38 = vor.u32 %v3728_v21, %v2856_v22 }
  0x4d   :  { %1681 = vmatmul.bf16.vlgmr.msra.gmra.mxu0 %v4176_v29  ;;  %v3030_v41 = vld [vmem:[#allocation6 + $0x440] sm:$0xf]  ;;  %v3431_v44 = vor.u32 %v3874_v37, %v3430_v36  ;;  %v3806_v45 = vld [vmem:[#allocation6 + $0x54c] sm:$0xf0]  ;;  %1694 = vmatmul.bf16.vlgmr.msra.gmra.mxu1 %v4180_v35  ;;  %v117_v23 = vmax.f32 %v109_v4, 0.0  ;;  %v118_v32 = vmax.f32 %v110_v11, 0.0  ;;  %v2731_v37 = vor.u32 %v3696_v18, %v2728_v19 }
  0x4e   :  { %v3158_v43 = vld [vmem:[#allocation6 + $0x540] sm:$0xf]  ;;  %v3838_v47 = vld [vmem:[#allocation6 + $0x64c] sm:$0xf0]  ;;  %v3031_v50 = vor.u32 %v3774_v42, %v3030_v41  ;;  %1742 = vmatpush.bf16.msrb.mxu1 %v3175_v39  ;;  %1755 = vmatpush.bf16.msrb.mxu2 %v3303_v40  ;;  %v3760_v26 = vld [vmem:[#allocation6 + $0x3e4] sm:$0xf] }
  0x4f   :  { %v3286_v46 = vld [vmem:[#allocation6 + $0x640] sm:$0xf]  ;;  %v3870_v49 = vld [vmem:[#allocation6 + $0x74c] sm:$0xf0]  ;;  %v3159_v53 = vor.u32 %v3806_v45, %v3158_v43  ;;  %1768 = vmatpush.bf16.msrb.mxu3 %v3431_v44  ;;  %v2984_v27 = vld [vmem:[#allocation6 + $0x3f0] sm:$0xf0] }
  0x50   :  { %v3414_v48 = vld [vmem:[#allocation6 + $0x740] sm:$0xf]  ;;  %v3770_v52 = vld [vmem:[#allocation6 + $0x42c] sm:$0xf0]  ;;  %v3287_v54 = vor.u32 %v3838_v47, %v3286_v46  ;;  %1730 = vmatpush.bf16.msrb.mxu0 %v3031_v50  ;;  %v3660_v39 = vld [vmem:[#allocation6 + $0xc4] sm:$0xf]  ;;  %v2987_v42 = vor.u32 %v3760_v26, %v2984_v27  ;;  %v4186_v46 = vpack.c.bf16 %v117_v23, %v117_v23  ;;  %v4190_v50 = vpack.c.bf16 %v118_v32, %v118_v32 }
  0x51   :  { %v3014_v51 = vld [vmem:[#allocation6 + $0x420] sm:$0xf]  ;;  %v3802_v56 = vld [vmem:[#allocation6 + $0x52c] sm:$0xf0]  ;;  %v3415_v58 = vor.u32 %v3870_v49, %v3414_v48  ;;  %v2584_v40 = vld [vmem:[#allocation6 + $0xd0] sm:$0xf0] }
  0x52   :  { %v3142_v55 = vld [vmem:[#allocation6 + $0x520] sm:$0xf]  ;;  %v3834_v60 = vld [vmem:[#allocation6 + $0x62c] sm:$0xf0]  ;;  %v3015_v0 = vor.u32 %v3770_v52, %v3014_v51  ;;  %1743 = vmatpush.bf16.msrb.mxu1 %v3159_v53  ;;  %1756 = vmatpush.bf16.msrb.mxu2 %v3287_v54  ;;  %v3692_v41 = vld [vmem:[#allocation6 + $0x1c4] sm:$0xf]  ;;  %v2587_v51 = vor.u32 %v3660_v39, %v2584_v40 }
  0x53   :  { %v3270_v59 = vld [vmem:[#allocation6 + $0x620] sm:$0xf]  ;;  %v101_v61 = vld [vmem:[#allocation2 + $0x10] sm:$0xff]  ;;  %v3143_v5 = vor.u32 %v3802_v56, %v3142_v55  ;;  %1769 = vmatpush.bf16.msrb.mxu3 %v3415_v58  ;;  %v3724_v44 = vld [vmem:[#allocation6 + $0x2c4] sm:$0xf] }
  0x54   :  { %v3398_v62 = vld [vmem:[#allocation6 + $0x720] sm:$0xf]  ;;  %v3866_v63 = vld [vmem:[#allocation6 + $0x72c] sm:$0xf0]  ;;  %v3271_v6 = vor.u32 %v3834_v60, %v3270_v59  ;;  %v107_v10 = vunpack.c.l.bf16 %v101_v61  ;;  %v108_v16 = vunpack.c.h.bf16 %v101_v61  ;;  %1731 = vmatpush.bf16.msrb.mxu0 %v3015_v0  ;;  %v2712_v43 = vld [vmem:[#allocation6 + $0x1d0] sm:$0xf0] }
  0x55   :  { %v2998_v1 = vld [vmem:[#allocation6 + $0x400] sm:$0xf]  ;;  %v3766_v2 = vld [vmem:[#allocation6 + $0x40c] sm:$0xf0]  ;;  %v3399_v12 = vor.u32 %v3866_v63, %v3398_v62  ;;  %v2840_v45 = vld [vmem:[#allocation6 + $0x2d0] sm:$0xf0]  ;;  %v2715_v53 = vor.u32 %v3692_v41, %v2712_v43 }
  0x56   :  { %v3126_v3 = vld [vmem:[#allocation6 + $0x500] sm:$0xf]  ;;  %v3798_v7 = vld [vmem:[#allocation6 + $0x50c] sm:$0xf0]  ;;  %v2999_v20 = vor.u32 %v3766_v2, %v2998_v1  ;;  %1744 = vmatpush.bf16.msrb.mxu1 %v3143_v5  ;;  %1757 = vmatpush.bf16.msrb.mxu2 %v3271_v6  ;;  %v115_v31 = vmax.f32 %v107_v10, 0.0  ;;  %v116_v36 = vmax.f32 %v108_v16, 0.0  ;;  %v2843_v54 = vor.u32 %v3724_v44, %v2840_v45 }
  0x57   :  { %v3254_v8 = vld [vmem:[#allocation6 + $0x600] sm:$0xf]  ;;  %v3830_v9 = vld [vmem:[#allocation6 + $0x60c] sm:$0xf0]  ;;  %v3127_v24 = vor.u32 %v3798_v7, %v3126_v3  ;;  %1770 = vmatpush.bf16.msrb.mxu3 %v3399_v12  ;;  %v3756_v47 = vld [vmem:[#allocation6 + $0x3c4] sm:$0xf] }
  0x58   :  { %v3382_v13 = vld [vmem:[#allocation6 + $0x700] sm:$0xf]  ;;  %v3862_v14 = vld [vmem:[#allocation6 + $0x70c] sm:$0xf0]  ;;  %v3255_v25 = vor.u32 %v3830_v9, %v3254_v8  ;;  %1732 = vmatpush.bf16.msrb.mxu0 %v2999_v20  ;;  %v2968_v48 = vld [vmem:[#allocation6 + $0x3d0] sm:$0xf0]  ;;  %v4188_v49 = vpack.c.bf16 %v115_v31, %v115_v31  ;;  %v4192_v52 = vpack.c.bf16 %v116_v36, %v116_v36 }
  0x59   :  { %v3383_v33 = vor.u32 %v3862_v14, %v3382_v13  ;;  %v3656_v55 = vld [vmem:[#allocation6 + $0xa4] sm:$0xf]  ;;  %v2568_v56 = vld [vmem:[#allocation6 + $0xb0] sm:$0xf0]  ;;  %v2971_v58 = vor.u32 %v3756_v47, %v2968_v48 }
  0x5a   :  { %1745 = vmatpush.bf16.msrb.mxu1 %v3127_v24  ;;  %1758 = vmatpush.bf16.msrb.mxu2 %v3255_v25  ;;  %v3688_v57 = vld [vmem:[#allocation6 + $0x1a4] sm:$0xf]  ;;  %v2696_v59 = vld [vmem:[#allocation6 + $0x1b0] sm:$0xf0]  ;;  %v2571_v0 = vor.u32 %v3656_v55, %v2568_v56 }
  0x5b   :  { %1771 = vmatpush.bf16.msrb.mxu3 %v3383_v33  ;;  %v3720_v60 = vld [vmem:[#allocation6 + $0x2a4] sm:$0xf]  ;;  %v2824_v61 = vld [vmem:[#allocation6 + $0x2b0] sm:$0xf0]  ;;  %v2699_v1 = vor.u32 %v3688_v57, %v2696_v59 }
  0x5c   :  { %1777 = vmatpush.bf16.msra.mxu0 %v2603_v34  ;;  %v3752_v62 = vld [vmem:[#allocation6 + $0x3a4] sm:$0xf]  ;;  %v2952_v63 = vld [vmem:[#allocation6 + $0x3b0] sm:$0xf0]  ;;  %v2827_v2 = vor.u32 %v3720_v60, %v2824_v61 }
  0x5d   :  { %1759 = vmatmul.bf16.vlgmr.msrb.gmra.mxu2 %v4186_v46  ;;  %1733 = vmatmul.bf16.vlgmr.msrb.gmra.mxu0 %v4188_v49  ;;  %v3652_v3 = vld [vmem:[#allocation6 + $0x84] sm:$0xf]  ;;  %v2552_v4 = vld [vmem:[#allocation6 + $0x90] sm:$0xf0]  ;;  %v2955_v6 = vor.u32 %v3752_v62, %v2952_v63 }
  0x5e   :  { %1790 = vmatpush.bf16.msra.mxu1 %v2731_v37  ;;  %1803 = vmatpush.bf16.msra.mxu2 %v2859_v38  ;;  %v3684_v5 = vld [vmem:[#allocation6 + $0x184] sm:$0xf]  ;;  %v2680_v7 = vld [vmem:[#allocation6 + $0x190] sm:$0xf0]  ;;  %v2555_v12 = vor.u32 %v3652_v3, %v2552_v4 }
  0x5f   :  { %1816 = vmatpush.bf16.msra.mxu3 %v2987_v42  ;;  %1746 = vmatmul.bf16.vlgmr.msrb.gmra.mxu1 %v4192_v52  ;;  %v3716_v8 = vld [vmem:[#allocation6 + $0x284] sm:$0xf]  ;;  %v2808_v9 = vld [vmem:[#allocation6 + $0x290] sm:$0xf0]  ;;  %v2683_v13 = vor.u32 %v3684_v5, %v2680_v7 }
  0x60   :  { %1772 = vmatmul.bf16.vlgmr.msrb.gmra.mxu3 %v4190_v50  ;;  %1778 = vmatpush.bf16.msra.mxu0 %v2587_v51  ;;  %v3748_v10 = vld [vmem:[#allocation6 + $0x384] sm:$0xf]  ;;  %v2936_v11 = vld [vmem:[#allocation6 + $0x390] sm:$0xf0]  ;;  %v2811_v14 = vor.u32 %v3716_v8, %v2808_v9 }
  0x61   :  { %v3648_v15 = vld [vmem:[#allocation6 + $0x64] sm:$0xf]  ;;  %v2536_v16 = vld [vmem:[#allocation6 + $0x70] sm:$0xf0]  ;;  %v2939_v18 = vor.u32 %v3748_v10, %v2936_v11 }
  0x62   :  { %1791 = vmatpush.bf16.msra.mxu1 %v2715_v53  ;;  %1804 = vmatpush.bf16.msra.mxu2 %v2843_v54  ;;  %v3680_v17 = vld [vmem:[#allocation6 + $0x164] sm:$0xf]  ;;  %v2664_v19 = vld [vmem:[#allocation6 + $0x170] sm:$0xf0]  ;;  %v2539_v24 = vor.u32 %v3648_v15, %v2536_v16 }
  0x63   :  { %1817 = vmatpush.bf16.msra.mxu3 %v2971_v58  ;;  %v3712_v20 = vld [vmem:[#allocation6 + $0x264] sm:$0xf]  ;;  %v2792_v21 = vld [vmem:[#allocation6 + $0x270] sm:$0xf0]  ;;  %v2667_v25 = vor.u32 %v3680_v17, %v2664_v19 }
  0x64   :  { %1779 = vmatpush.bf16.msra.mxu0 %v2571_v0  ;;  %v3744_v22 = vld [vmem:[#allocation6 + $0x364] sm:$0xf]  ;;  %v2920_v23 = vld [vmem:[#allocation6 + $0x370] sm:$0xf0]  ;;  %v2795_v26 = vor.u32 %v3712_v20, %v2792_v21 }
  0x65   :  { %v3644_v27 = vld [vmem:[#allocation6 + $0x44] sm:$0xf]  ;;  %v2520_v31 = vld [vmem:[#allocation6 + $0x50] sm:$0xf0]  ;;  %v2923_v33 = vor.u32 %v3744_v22, %v2920_v23 }
  0x66   :  { %1792 = vmatpush.bf16.msra.mxu1 %v2699_v1  ;;  %1805 = vmatpush.bf16.msra.mxu2 %v2827_v2  ;;  %v3676_v32 = vld [vmem:[#allocation6 + $0x144] sm:$0xf]  ;;  %v2648_v34 = vld [vmem:[#allocation6 + $0x150] sm:$0xf0]  ;;  %v2523_v40 = vor.u32 %v3644_v27, %v2520_v31 }
  0x67   :  { %1818 = vmatpush.bf16.msra.mxu3 %v2955_v6  ;;  %v3708_v36 = vld [vmem:[#allocation6 + $0x244] sm:$0xf]  ;;  %v2776_v37 = vld [vmem:[#allocation6 + $0x250] sm:$0xf0]  ;;  %v2651_v41 = vor.u32 %v3676_v32, %v2648_v34 }
  0x68   :  { %1780 = vmatpush.bf16.msra.mxu0 %v2555_v12  ;;  %v3740_v38 = vld [vmem:[#allocation6 + $0x344] sm:$0xf]  ;;  %v2904_v39 = vld [vmem:[#allocation6 + $0x350] sm:$0xf0]  ;;  %v2779_v42 = vor.u32 %v3708_v36, %v2776_v37 }
  0x69   :  { %v3640_v43 = vld [vmem:[#allocation6 + $0x24] sm:$0xf]  ;;  %v2504_v44 = vld [vmem:[#allocation6 + $0x30] sm:$0xf0]  ;;  %v2907_v47 = vor.u32 %v3740_v38, %v2904_v39 }
  0x6a   :  { %1793 = vmatpush.bf16.msra.mxu1 %v2683_v13  ;;  %1806 = vmatpush.bf16.msra.mxu2 %v2811_v14  ;;  %v3672_v45 = vld [vmem:[#allocation6 + $0x124] sm:$0xf]  ;;  %v2632_v48 = vld [vmem:[#allocation6 + $0x130] sm:$0xf0]  ;;  %v2507_v56 = vor.u32 %v3640_v43, %v2504_v44 }
  0x6b   :  { %1819 = vmatpush.bf16.msra.mxu3 %v2939_v18  ;;  %v3704_v51 = vld [vmem:[#allocation6 + $0x224] sm:$0xf]  ;;  %v2760_v53 = vld [vmem:[#allocation6 + $0x230] sm:$0xf0]  ;;  %v2635_v59 = vor.u32 %v3672_v45, %v2632_v48 }
  0x6c   :  { %1781 = vmatpush.bf16.msra.mxu0 %v2539_v24  ;;  %v3736_v54 = vld [vmem:[#allocation6 + $0x324] sm:$0xf]  ;;  %v2888_v55 = vld [vmem:[#allocation6 + $0x330] sm:$0xf0]  ;;  %v2763_v60 = vor.u32 %v3704_v51, %v2760_v53 }
  0x6d   :  { %v3636_v57 = vld [vmem:[#allocation6 + $0x4] sm:$0xf]  ;;  %v2488_v58 = vld [vmem:[#allocation6 + $0x10] sm:$0xf0]  ;;  %v2891_v0 = vor.u32 %v3736_v54, %v2888_v55 }
  0x6e   :  { %1794 = vmatpush.bf16.msra.mxu1 %v2667_v25  ;;  %1807 = vmatpush.bf16.msra.mxu2 %v2795_v26  ;;  %v3668_v61 = vld [vmem:[#allocation6 + $0x104] sm:$0xf]  ;;  %v2616_v62 = vld [vmem:[#allocation6 + $0x110] sm:$0xf0]  ;;  %v2491_v7 = vor.u32 %v3636_v57, %v2488_v58 }
  0x6f   :  { %1820 = vmatpush.bf16.msra.mxu3 %v2923_v33  ;;  %v3700_v63 = vld [vmem:[#allocation6 + $0x204] sm:$0xf]  ;;  %v2744_v1 = vld [vmem:[#allocation6 + $0x210] sm:$0xf0]  ;;  %v2619_v11 = vor.u32 %v3668_v61, %v2616_v62 }
  0x70   :  { %1782 = vmatpush.bf16.msra.mxu0 %v2523_v40  ;;  %v3732_v2 = vld [vmem:[#allocation6 + $0x304] sm:$0xf]  ;;  %v2872_v3 = vld [vmem:[#allocation6 + $0x310] sm:$0xf0]  ;;  %v2747_v12 = vor.u32 %v3700_v63, %v2744_v1 }
  0x71   :  { %v3792_v4 = vld [vmem:[#allocation6 + $0x4e4] sm:$0xf]  ;;  %v3112_v5 = vld [vmem:[#allocation6 + $0x4f0] sm:$0xf0]  ;;  %v2875_v15 = vor.u32 %v3732_v2, %v2872_v3 }
  0x72   :  { %1795 = vmatpush.bf16.msra.mxu1 %v2651_v41  ;;  %1808 = vmatpush.bf16.msra.mxu2 %v2779_v42  ;;  %v3824_v6 = vld [vmem:[#allocation6 + $0x5e4] sm:$0xf]  ;;  %v3240_v8 = vld [vmem:[#allocation6 + $0x5f0] sm:$0xf0]  ;;  %v3115_v16 = vor.u32 %v3792_v4, %v3112_v5 }
  0x73   :  { %1821 = vmatpush.bf16.msra.mxu3 %v2907_v47  ;;  %v3856_v9 = vld [vmem:[#allocation6 + $0x6e4] sm:$0xf]  ;;  %v3368_v10 = vld [vmem:[#allocation6 + $0x6f0] sm:$0xf0]  ;;  %v3243_v17 = vor.u32 %v3824_v6, %v3240_v8 }
  0x74   :  { %1783 = vmatpush.bf16.msra.mxu0 %v2507_v56  ;;  %v3888_v13 = vld [vmem:[#allocation6 + $0x7e4] sm:$0xf]  ;;  %v3496_v14 = vld [vmem:[#allocation6 + $0x7f0] sm:$0xf0]  ;;  %v3371_v18 = vor.u32 %v3856_v9, %v3368_v10 }
  0x75   :  { %v3788_v19 = vld [vmem:[#allocation6 + $0x4c4] sm:$0xf]  ;;  %v3096_v20 = vld [vmem:[#allocation6 + $0x4d0] sm:$0xf0]  ;;  %v3499_v22 = vor.u32 %v3888_v13, %v3496_v14 }
  0x76   :  { %1796 = vmatpush.bf16.msra.mxu1 %v2635_v59  ;;  %1809 = vmatpush.bf16.msra.mxu2 %v2763_v60  ;;  %v3820_v21 = vld [vmem:[#allocation6 + $0x5c4] sm:$0xf]  ;;  %v3224_v23 = vld [vmem:[#allocation6 + $0x5d0] sm:$0xf0]  ;;  %v3099_v31 = vor.u32 %v3788_v19, %v3096_v20 }
  0x77   :  { %1822 = vmatpush.bf16.msra.mxu3 %v2891_v0  ;;  %v3852_v24 = vld [vmem:[#allocation6 + $0x6c4] sm:$0xf]  ;;  %v3352_v25 = vld [vmem:[#allocation6 + $0x6d0] sm:$0xf0]  ;;  %v3227_v32 = vor.u32 %v3820_v21, %v3224_v23 }
  0x78   :  { %1784 = vmatpush.bf16.msra.mxu0 %v2491_v7  ;;  %v3884_v26 = vld [vmem:[#allocation6 + $0x7c4] sm:$0xf]  ;;  %v3480_v27 = vld [vmem:[#allocation6 + $0x7d0] sm:$0xf0]  ;;  %v3355_v33 = vor.u32 %v3852_v24, %v3352_v25 }
  0x79   :  { %v3784_v34 = vld [vmem:[#allocation6 + $0x4a4] sm:$0xf]  ;;  %v3080_v36 = vld [vmem:[#allocation6 + $0x4b0] sm:$0xf0]  ;;  %v3483_v38 = vor.u32 %v3884_v26, %v3480_v27 }
  0x7a   :  { %1797 = vmatpush.bf16.msra.mxu1 %v2619_v11  ;;  %1810 = vmatpush.bf16.msra.mxu2 %v2747_v12  ;;  %v3816_v37 = vld [vmem:[#allocation6 + $0x5a4] sm:$0xf]  ;;  %v3208_v39 = vld [vmem:[#allocation6 + $0x5b0] sm:$0xf0]  ;;  %v3083_v44 = vor.u32 %v3784_v34, %v3080_v36 }
  0x7b   :  { %1823 = vmatpush.bf16.msra.mxu3 %v2875_v15  ;;  %v3848_v40 = vld [vmem:[#allocation6 + $0x6a4] sm:$0xf]  ;;  %v3336_v41 = vld [vmem:[#allocation6 + $0x6b0] sm:$0xf0]  ;;  %1785 = vmatmul.bf16.vlgmr.msra.gmra.mxu0 %v4176_v29  ;;  %v3211_v45 = vor.u32 %v3816_v37, %v3208_v39 }
  0x7c   :  { %1829 = vmatpush.bf16.msrb.mxu0 %v3115_v16  ;;  %v3880_v42 = vld [vmem:[#allocation6 + $0x7a4] sm:$0xf]  ;;  %v3464_v43 = vld [vmem:[#allocation6 + $0x7b0] sm:$0xf0]  ;;  %v3339_v47 = vor.u32 %v3848_v40, %v3336_v41 }
  0x7d   :  { %1811 = vmatmul.bf16.vlgmr.msra.gmra.mxu2 %v4174_v28  ;;  %1798 = vmatmul.bf16.vlgmr.msra.gmra.mxu1 %v4180_v35  ;;  %v3780_v48 = vld [vmem:[#allocation6 + $0x484] sm:$0xf]  ;;  %v3064_v51 = vld [vmem:[#allocation6 + $0x490] sm:$0xf0]  ;;  %v3467_v54 = vor.u32 %v3880_v42, %v3464_v43 }
  0x7e   :  { %1842 = vmatpush.bf16.msrb.mxu1 %v3243_v17  ;;  %1855 = vmatpush.bf16.msrb.mxu2 %v3371_v18  ;;  %v3812_v53 = vld [vmem:[#allocation6 + $0x584] sm:$0xf]  ;;  %v3192_v55 = vld [vmem:[#allocation6 + $0x590] sm:$0xf0]  ;;  %v3067_v60 = vor.u32 %v3780_v48, %v3064_v51  ;;  %v2606_v51 = vld [vmem:[#allocation6 + $0xe8] sm:$0xf] }
  0x7f   :  { %1868 = vmatpush.bf16.msrb.mxu3 %v3499_v22  ;;  %v3844_v56 = vld [vmem:[#allocation6 + $0x684] sm:$0xf]  ;;  %v3320_v57 = vld [vmem:[#allocation6 + $0x690] sm:$0xf0]  ;;  %v3195_v61 = vor.u32 %v3812_v53, %v3192_v55  ;;  %v3667_v53 = vld [vmem:[#allocation6 + $0xf4] sm:$0xf0] }
  0x80   :  { %1824 = vmatmul.bf16.vlgmr.msra.gmra.mxu3 %v4178_v30  ;;  %1830 = vmatpush.bf16.msrb.mxu0 %v3099_v31  ;;  %v3876_v58 = vld [vmem:[#allocation6 + $0x784] sm:$0xf]  ;;  %v3448_v59 = vld [vmem:[#allocation6 + $0x790] sm:$0xf0]  ;;  %v3323_v62 = vor.u32 %v3844_v56, %v3320_v57  ;;  %v3699_v56 = vld [vmem:[#allocation6 + $0x1f4] sm:$0xf0] }
  0x81   :  { %v3776_v63 = vld [vmem:[#allocation6 + $0x464] sm:$0xf]  ;;  %v3048_v0 = vld [vmem:[#allocation6 + $0x470] sm:$0xf0]  ;;  %v3451_v2 = vor.u32 %v3876_v58, %v3448_v59  ;;  %v2862_v57 = vld [vmem:[#allocation6 + $0x2e8] sm:$0xf] }
  0x82   :  { %1843 = vmatpush.bf16.msrb.mxu1 %v3227_v32  ;;  %1856 = vmatpush.bf16.msrb.mxu2 %v3355_v33  ;;  %v3808_v1 = vld [vmem:[#allocation6 + $0x564] sm:$0xf]  ;;  %v3176_v3 = vld [vmem:[#allocation6 + $0x570] sm:$0xf0]  ;;  %v3051_v8 = vor.u32 %v3776_v63, %v3048_v0  ;;  %v3731_v58 = vld [vmem:[#allocation6 + $0x2f4] sm:$0xf0]  ;;  %v2607_v0 = vor.u32 %v3667_v53, %v2606_v51 }
  0x83   :  { %1869 = vmatpush.bf16.msrb.mxu3 %v3483_v38  ;;  %v3840_v4 = vld [vmem:[#allocation6 + $0x664] sm:$0xf]  ;;  %v3304_v5 = vld [vmem:[#allocation6 + $0x670] sm:$0xf0]  ;;  %v3179_v9 = vor.u32 %v3808_v1, %v3176_v3  ;;  %v2590_v3 = vld [vmem:[#allocation6 + $0xc8] sm:$0xf] }
  0x84   :  { %1831 = vmatpush.bf16.msrb.mxu0 %v3083_v44  ;;  %v3872_v6 = vld [vmem:[#allocation6 + $0x764] sm:$0xf]  ;;  %v3432_v7 = vld [vmem:[#allocation6 + $0x770] sm:$0xf0]  ;;  %v3307_v10 = vor.u32 %v3840_v4, %v3304_v5  ;;  %v3663_v4 = vld [vmem:[#allocation6 + $0xd4] sm:$0xf0] }
  0x85   :  { %v3772_v11 = vld [vmem:[#allocation6 + $0x444] sm:$0xf]  ;;  %v3032_v12 = vld [vmem:[#allocation6 + $0x450] sm:$0xf0]  ;;  %v3435_v14 = vor.u32 %v3872_v6, %v3432_v7  ;;  %v2718_v5 = vld [vmem:[#allocation6 + $0x1c8] sm:$0xf] }
  0x86   :  { %1844 = vmatpush.bf16.msrb.mxu1 %v3211_v45  ;;  %1857 = vmatpush.bf16.msrb.mxu2 %v3339_v47  ;;  %v3804_v13 = vld [vmem:[#allocation6 + $0x544] sm:$0xf]  ;;  %v3160_v15 = vld [vmem:[#allocation6 + $0x550] sm:$0xf0]  ;;  %v3035_v20 = vor.u32 %v3772_v11, %v3032_v12  ;;  %v3695_v7 = vld [vmem:[#allocation6 + $0x1d4] sm:$0xf0]  ;;  %v2591_v12 = vor.u32 %v3663_v4, %v2590_v3 }
  0x87   :  { %1870 = vmatpush.bf16.msrb.mxu3 %v3467_v54  ;;  %v3836_v16 = vld [vmem:[#allocation6 + $0x644] sm:$0xf]  ;;  %v3288_v17 = vld [vmem:[#allocation6 + $0x650] sm:$0xf0]  ;;  %v3163_v21 = vor.u32 %v3804_v13, %v3160_v15  ;;  %v2734_v54 = vld [vmem:[#allocation6 + $0x1e8] sm:$0xf]  ;;  %v2719_v13 = vor.u32 %v3695_v7, %v2718_v5 }
  0x88   :  { %1832 = vmatpush.bf16.msrb.mxu0 %v3067_v60  ;;  %v3868_v18 = vld [vmem:[#allocation6 + $0x744] sm:$0xf]  ;;  %v3416_v19 = vld [vmem:[#allocation6 + $0x750] sm:$0xf0]  ;;  %v3291_v22 = vor.u32 %v3836_v16, %v3288_v17  ;;  %v2735_v1 = vor.u32 %v3699_v56, %v2734_v54  ;;  %v3759_v11 = vld [vmem:[#allocation6 + $0x3d4] sm:$0xf0] }
  0x89   :  { %v3768_v23 = vld [vmem:[#allocation6 + $0x424] sm:$0xf]  ;;  %v3016_v24 = vld [vmem:[#allocation6 + $0x430] sm:$0xf0]  ;;  %v3419_v26 = vor.u32 %v3868_v18, %v3416_v19  ;;  %v2574_v15 = vld [vmem:[#allocation6 + $0xa8] sm:$0xf] }
  0x8a   :  { %1845 = vmatpush.bf16.msrb.mxu1 %v3195_v61  ;;  %1858 = vmatpush.bf16.msrb.mxu2 %v3323_v62  ;;  %v3800_v25 = vld [vmem:[#allocation6 + $0x524] sm:$0xf]  ;;  %v3144_v27 = vld [vmem:[#allocation6 + $0x530] sm:$0xf0]  ;;  %v3019_v36 = vor.u32 %v3768_v23, %v3016_v24  ;;  %v2990_v61 = vld [vmem:[#allocation6 + $0x3e8] sm:$0xf] }
  0x8b   :  { %1871 = vmatpush.bf16.msrb.mxu3 %v3451_v2  ;;  %v3832_v31 = vld [vmem:[#allocation6 + $0x624] sm:$0xf]  ;;  %v3272_v32 = vld [vmem:[#allocation6 + $0x630] sm:$0xf0]  ;;  %v3147_v39 = vor.u32 %v3800_v25, %v3144_v27  ;;  %v3763_v62 = vld [vmem:[#allocation6 + $0x3f4] sm:$0xf0]  ;;  %v2863_v2 = vor.u32 %v3731_v58, %v2862_v57 }
  0x8c   :  { %1833 = vmatpush.bf16.msrb.mxu0 %v3051_v8  ;;  %v3864_v33 = vld [vmem:[#allocation6 + $0x724] sm:$0xf]  ;;  %v3400_v34 = vld [vmem:[#allocation6 + $0x730] sm:$0xf0]  ;;  %v3275_v40 = vor.u32 %v3832_v31, %v3272_v32  ;;  %v2991_v6 = vor.u32 %v3763_v62, %v2990_v61  ;;  %v2846_v8 = vld [vmem:[#allocation6 + $0x2c8] sm:$0xf] }
  0x8d   :  { %v3764_v37 = vld [vmem:[#allocation6 + $0x404] sm:$0xf]  ;;  %v3000_v38 = vld [vmem:[#allocation6 + $0x410] sm:$0xf0]  ;;  %v3403_v44 = vor.u32 %v3864_v33, %v3400_v34  ;;  %v3659_v16 = vld [vmem:[#allocation6 + $0xb4] sm:$0xf0] }
  0x8e   :  { %1846 = vmatpush.bf16.msrb.mxu1 %v3179_v9  ;;  %1859 = vmatpush.bf16.msrb.mxu2 %v3307_v10  ;;  %v3796_v41 = vld [vmem:[#allocation6 + $0x504] sm:$0xf]  ;;  %v3128_v42 = vld [vmem:[#allocation6 + $0x510] sm:$0xf0]  ;;  %v3003_v55 = vor.u32 %v3764_v37, %v3000_v38  ;;  %v3727_v9 = vld [vmem:[#allocation6 + $0x2d4] sm:$0xf0]  ;;  %v2575_v24 = vor.u32 %v3659_v16, %v2574_v15 }
  0x8f   :  { %1872 = vmatpush.bf16.msrb.mxu3 %v3435_v14  ;;  %v3828_v43 = vld [vmem:[#allocation6 + $0x604] sm:$0xf]  ;;  %v3256_v45 = vld [vmem:[#allocation6 + $0x610] sm:$0xf0]  ;;  %v3131_v59 = vor.u32 %v3796_v41, %v3128_v42  ;;  %v2974_v10 = vld [vmem:[#allocation6 + $0x3c8] sm:$0xf]  ;;  %v2847_v14 = vor.u32 %v3727_v9, %v2846_v8 }
  0x90   :  { %1834 = vmatpush.bf16.msrb.mxu0 %v3035_v20  ;;  %v3860_v47 = vld [vmem:[#allocation6 + $0x704] sm:$0xf]  ;;  %v3384_v48 = vld [vmem:[#allocation6 + $0x710] sm:$0xf0]  ;;  %v3259_v60 = vor.u32 %v3828_v43, %v3256_v45  ;;  %v2702_v17 = vld [vmem:[#allocation6 + $0x1a8] sm:$0xf]  ;;  %v2975_v18 = vor.u32 %v3759_v11, %v2974_v10 }
  0x91   :  { %v3387_v63 = vor.u32 %v3860_v47, %v3384_v48  ;;  %v3691_v19 = vld [vmem:[#allocation6 + $0x1b4] sm:$0xf0]  ;;  %v2830_v20 = vld [vmem:[#allocation6 + $0x2a8] sm:$0xf] }
  0x92   :  { %1847 = vmatpush.bf16.msrb.mxu1 %v3163_v21  ;;  %1860 = vmatpush.bf16.msrb.mxu2 %v3291_v22  ;;  %v3723_v21 = vld [vmem:[#allocation6 + $0x2b4] sm:$0xf0]  ;;  %v2958_v22 = vld [vmem:[#allocation6 + $0x3a8] sm:$0xf]  ;;  %v2703_v25 = vor.u32 %v3691_v19, %v2702_v17 }
  0x93   :  { %1873 = vmatpush.bf16.msrb.mxu3 %v3419_v26  ;;  %v3755_v23 = vld [vmem:[#allocation6 + $0x3b4] sm:$0xf0]  ;;  %v2831_v26 = vor.u32 %v3723_v21, %v2830_v20  ;;  %v2558_v27 = vld [vmem:[#allocation6 + $0x88] sm:$0xf] }
  0x94   :  { %1835 = vmatpush.bf16.msrb.mxu0 %v3019_v36  ;;  %v3655_v31 = vld [vmem:[#allocation6 + $0x94] sm:$0xf0]  ;;  %v2686_v32 = vld [vmem:[#allocation6 + $0x188] sm:$0xf]  ;;  %v2959_v33 = vor.u32 %v3755_v23, %v2958_v22 }
  0x95   :  { %v3687_v34 = vld [vmem:[#allocation6 + $0x194] sm:$0xf0]  ;;  %v2814_v36 = vld [vmem:[#allocation6 + $0x288] sm:$0xf] }
  0x96   :  { %1848 = vmatpush.bf16.msrb.mxu1 %v3147_v39  ;;  %1861 = vmatpush.bf16.msrb.mxu2 %v3275_v40  ;;  %v3719_v37 = vld [vmem:[#allocation6 + $0x294] sm:$0xf0]  ;;  %v2942_v38 = vld [vmem:[#allocation6 + $0x388] sm:$0xf]  ;;  %v2559_v40 = vor.u32 %v3655_v31, %v2558_v27  ;;  %v2687_v41 = vor.u32 %v3687_v34, %v2686_v32 }
  0x97   :  { %1874 = vmatpush.bf16.msrb.mxu3 %v3403_v44  ;;  %v3751_v39 = vld [vmem:[#allocation6 + $0x394] sm:$0xf0]  ;;  %v2815_v42 = vor.u32 %v3719_v37, %v2814_v36  ;;  %v2542_v43 = vld [vmem:[#allocation6 + $0x68] sm:$0xf] }
  0x98   :  { %1836 = vmatpush.bf16.msrb.mxu0 %v3003_v55  ;;  %v3651_v44 = vld [vmem:[#allocation6 + $0x74] sm:$0xf0]  ;;  %v2670_v45 = vld [vmem:[#allocation6 + $0x168] sm:$0xf]  ;;  %v2943_v47 = vor.u32 %v3751_v39, %v2942_v38 }
  0x99   :  { %v3683_v48 = vld [vmem:[#allocation6 + $0x174] sm:$0xf0]  ;;  %v2798_v51 = vld [vmem:[#allocation6 + $0x268] sm:$0xf]  ;;  %v2543_v56 = vor.u32 %v3651_v44, %v2542_v43 }
  0x9a   :  { %1849 = vmatpush.bf16.msrb.mxu1 %v3131_v59  ;;  %1862 = vmatpush.bf16.msrb.mxu2 %v3259_v60  ;;  %v3715_v53 = vld [vmem:[#allocation6 + $0x274] sm:$0xf0]  ;;  %v2926_v54 = vld [vmem:[#allocation6 + $0x368] sm:$0xf]  ;;  %v2671_v57 = vor.u32 %v3683_v48, %v2670_v45 }
  0x9b   :  { %1875 = vmatpush.bf16.msrb.mxu3 %v3387_v63  ;;  %1837 = vmatmul.bf16.vlgmr.msrb.gmra.mxu0 %v4188_v49  ;;  %v3747_v55 = vld [vmem:[#allocation6 + $0x374] sm:$0xf0]  ;;  %v2799_v58 = vor.u32 %v3715_v53, %v2798_v51  ;;  %v2526_v59 = vld [vmem:[#allocation6 + $0x48] sm:$0xf] }
  0x9c   :  { %1881 = vmatpush.bf16.msra.mxu0 %v2607_v0  ;;  %v3647_v60 = vld [vmem:[#allocation6 + $0x54] sm:$0xf0]  ;;  %v2654_v61 = vld [vmem:[#allocation6 + $0x148] sm:$0xf]  ;;  %v2927_v62 = vor.u32 %v3747_v55, %v2926_v54 }
  0x9d   :  { %1863 = vmatmul.bf16.vlgmr.msrb.gmra.mxu2 %v4186_v46  ;;  %1850 = vmatmul.bf16.vlgmr.msrb.gmra.mxu1 %v4192_v52  ;;  %v3679_v63 = vld [vmem:[#allocation6 + $0x154] sm:$0xf0]  ;;  %v2782_v0 = vld [vmem:[#allocation6 + $0x248] sm:$0xf]  ;;  %v2527_v4 = vor.u32 %v3647_v60, %v2526_v59 }
  0x9e   :  { %1894 = vmatpush.bf16.msra.mxu1 %v2735_v1  ;;  %1907 = vmatpush.bf16.msra.mxu2 %v2863_v2  ;;  %v3711_v1 = vld [vmem:[#allocation6 + $0x254] sm:$0xf0]  ;;  %v2910_v2 = vld [vmem:[#allocation6 + $0x348] sm:$0xf]  ;;  %v2655_v5 = vor.u32 %v3679_v63, %v2654_v61 }
  0x9f   :  { %1920 = vmatpush.bf16.msra.mxu3 %v2991_v6  ;;  %v3743_v3 = vld [vmem:[#allocation6 + $0x354] sm:$0xf0]  ;;  %v2783_v6 = vor.u32 %v3711_v1, %v2782_v0  ;;  %v2510_v7 = vld [vmem:[#allocation6 + $0x28] sm:$0xf] }
  0xa0   :  { %1876 = vmatmul.bf16.vlgmr.msrb.gmra.mxu3 %v4190_v50  ;;  %1882 = vmatpush.bf16.msra.mxu0 %v2591_v12  ;;  %v3643_v8 = vld [vmem:[#allocation6 + $0x34] sm:$0xf0]  ;;  %v2638_v9 = vld [vmem:[#allocation6 + $0x128] sm:$0xf]  ;;  %v2911_v10 = vor.u32 %v3743_v3, %v2910_v2 }
  0xa1   :  { %v3675_v11 = vld [vmem:[#allocation6 + $0x134] sm:$0xf0]  ;;  %v2766_v12 = vld [vmem:[#allocation6 + $0x228] sm:$0xf]  ;;  %v2511_v16 = vor.u32 %v3643_v8, %v2510_v7 }
  0xa2   :  { %1895 = vmatpush.bf16.msra.mxu1 %v2719_v13  ;;  %1908 = vmatpush.bf16.msra.mxu2 %v2847_v14  ;;  %v3707_v13 = vld [vmem:[#allocation6 + $0x234] sm:$0xf0]  ;;  %v2894_v14 = vld [vmem:[#allocation6 + $0x328] sm:$0xf]  ;;  %v2639_v19 = vor.u32 %v3675_v11, %v2638_v9 }
  0xa3   :  { %1921 = vmatpush.bf16.msra.mxu3 %v2975_v18  ;;  %v3739_v15 = vld [vmem:[#allocation6 + $0x334] sm:$0xf0]  ;;  %v2494_v17 = vld [vmem:[#allocation6 + $0x8] sm:$0xf]  ;;  %v2767_v20 = vor.u32 %v3707_v13, %v2766_v12 }
  0xa4   :  { %1883 = vmatpush.bf16.msra.mxu0 %v2575_v24  ;;  %v3639_v18 = vld [vmem:[#allocation6 + $0x14] sm:$0xf0]  ;;  %v2622_v21 = vld [vmem:[#allocation6 + $0x108] sm:$0xf]  ;;  %v2895_v24 = vor.u32 %v3739_v15, %v2894_v14 }
  0xa5   :  { %v3671_v22 = vld [vmem:[#allocation6 + $0x114] sm:$0xf0]  ;;  %v2750_v23 = vld [vmem:[#allocation6 + $0x208] sm:$0xf]  ;;  %v2495_v34 = vor.u32 %v3639_v18, %v2494_v17 }
  0xa6   :  { %1896 = vmatpush.bf16.msra.mxu1 %v2703_v25  ;;  %1909 = vmatpush.bf16.msra.mxu2 %v2831_v26  ;;  %v3703_v25 = vld [vmem:[#allocation6 + $0x214] sm:$0xf0]  ;;  %v2878_v26 = vld [vmem:[#allocation6 + $0x308] sm:$0xf]  ;;  %v2623_v39 = vor.u32 %v3671_v22, %v2622_v21 }
  0xa7   :  { %1922 = vmatpush.bf16.msra.mxu3 %v2959_v33  ;;  %v3735_v27 = vld [vmem:[#allocation6 + $0x314] sm:$0xf0]  ;;  %v3118_v31 = vld [vmem:[#allocation6 + $0x4e8] sm:$0xf] }
  0xa8   :  { %1884 = vmatpush.bf16.msra.mxu0 %v2559_v40  ;;  %v3795_v32 = vld [vmem:[#allocation6 + $0x4f4] sm:$0xf0]  ;;  %v3246_v33 = vld [vmem:[#allocation6 + $0x5e8] sm:$0xf]  ;;  %v2751_v40 = vor.u32 %v3703_v25, %v2750_v23  ;;  %v2879_v43 = vor.u32 %v3735_v27, %v2878_v26 }
  0xa9   :  { %v3827_v36 = vld [vmem:[#allocation6 + $0x5f4] sm:$0xf0]  ;;  %v3374_v37 = vld [vmem:[#allocation6 + $0x6e8] sm:$0xf]  ;;  %v3119_v44 = vor.u32 %v3795_v32, %v3118_v31 }
  0xaa   :  { %1897 = vmatpush.bf16.msra.mxu1 %v2687_v41  ;;  %1910 = vmatpush.bf16.msra.mxu2 %v2815_v42  ;;  %v3859_v38 = vld [vmem:[#allocation6 + $0x6f4] sm:$0xf0]  ;;  %v3502_v41 = vld [vmem:[#allocation6 + $0x7e8] sm:$0xf]  ;;  %v3247_v45 = vor.u32 %v3827_v36, %v3246_v33  ;;  %v4210_v33 = vld [vmem:[#allocation8] sm:$0xf] }
  0xab   :  { %1923 = vmatpush.bf16.msra.mxu3 %v2943_v47  ;;  %v3891_v42 = vld [vmem:[#allocation6 + $0x7f4] sm:$0xf0]  ;;  %v3375_v47 = vor.u32 %v3859_v38, %v3374_v37  ;;  %v3102_v48 = vld [vmem:[#allocation6 + $0x4c8] sm:$0xf] }
  0xac   :  { %1885 = vmatpush.bf16.msra.mxu0 %v2543_v56  ;;  %v3791_v51 = vld [vmem:[#allocation6 + $0x4d4] sm:$0xf0]  ;;  %v3230_v53 = vld [vmem:[#allocation6 + $0x5c8] sm:$0xf]  ;;  %v3503_v54 = vor.u32 %v3891_v42, %v3502_v41 }
  0xad   :  { %v3823_v55 = vld [vmem:[#allocation6 + $0x5d4] sm:$0xf0]  ;;  %v3358_v56 = vld [vmem:[#allocation6 + $0x6c8] sm:$0xf]  ;;  %v3103_v60 = vor.u32 %v3791_v51, %v3102_v48 }
  0xae   :  { %1898 = vmatpush.bf16.msra.mxu1 %v2671_v57  ;;  %1911 = vmatpush.bf16.msra.mxu2 %v2799_v58  ;;  %v3855_v57 = vld [vmem:[#allocation6 + $0x6d4] sm:$0xf0]  ;;  %v3486_v58 = vld [vmem:[#allocation6 + $0x7c8] sm:$0xf]  ;;  %v3231_v61 = vor.u32 %v3823_v55, %v3230_v53 }
  0xaf   :  { %1924 = vmatpush.bf16.msra.mxu3 %v2927_v62  ;;  %v3887_v59 = vld [vmem:[#allocation6 + $0x7d4] sm:$0xf0]  ;;  %v3359_v62 = vor.u32 %v3855_v57, %v3358_v56  ;;  %v3086_v63 = vld [vmem:[#allocation6 + $0x4a8] sm:$0xf] }
  0xb0   :  { %1886 = vmatpush.bf16.msra.mxu0 %v2527_v4  ;;  %v3787_v0 = vld [vmem:[#allocation6 + $0x4b4] sm:$0xf0]  ;;  %v3214_v1 = vld [vmem:[#allocation6 + $0x5a8] sm:$0xf]  ;;  %v3487_v2 = vor.u32 %v3887_v59, %v3486_v58 }
  0xb1   :  { %v3819_v3 = vld [vmem:[#allocation6 + $0x5b4] sm:$0xf0]  ;;  %v3342_v4 = vld [vmem:[#allocation6 + $0x6a8] sm:$0xf]  ;;  %v3087_v8 = vor.u32 %v3787_v0, %v3086_v63 }
  0xb2   :  { %1899 = vmatpush.bf16.msra.mxu1 %v2655_v5  ;;  %1912 = vmatpush.bf16.msra.mxu2 %v2783_v6  ;;  %v3851_v5 = vld [vmem:[#allocation6 + $0x6b4] sm:$0xf0]  ;;  %v3470_v6 = vld [vmem:[#allocation6 + $0x7a8] sm:$0xf]  ;;  %v3215_v9 = vor.u32 %v3819_v3, %v3214_v1 }
  0xb3   :  { %1925 = vmatpush.bf16.msra.mxu3 %v2911_v10  ;;  %v3883_v7 = vld [vmem:[#allocation6 + $0x7b4] sm:$0xf0]  ;;  %v3343_v10 = vor.u32 %v3851_v5, %v3342_v4  ;;  %v3070_v11 = vld [vmem:[#allocation6 + $0x488] sm:$0xf] }
  0xb4   :  { %1887 = vmatpush.bf16.msra.mxu0 %v2511_v16  ;;  %v3783_v12 = vld [vmem:[#allocation6 + $0x494] sm:$0xf0]  ;;  %v3198_v13 = vld [vmem:[#allocation6 + $0x588] sm:$0xf]  ;;  %v3471_v14 = vor.u32 %v3883_v7, %v3470_v6 }
  0xb5   :  { %v3815_v15 = vld [vmem:[#allocation6 + $0x594] sm:$0xf0]  ;;  %v3326_v16 = vld [vmem:[#allocation6 + $0x688] sm:$0xf] }
  0xb6   :  { %1900 = vmatpush.bf16.msra.mxu1 %v2639_v19  ;;  %1913 = vmatpush.bf16.msra.mxu2 %v2767_v20  ;;  %v3847_v17 = vld [vmem:[#allocation6 + $0x694] sm:$0xf0]  ;;  %v3454_v18 = vld [vmem:[#allocation6 + $0x788] sm:$0xf]  ;;  %v3071_v20 = vor.u32 %v3783_v12, %v3070_v11  ;;  %v3199_v22 = vor.u32 %v3815_v15, %v3198_v13 }
  0xb7   :  { %1926 = vmatpush.bf16.msra.mxu3 %v2895_v24  ;;  %v3879_v19 = vld [vmem:[#allocation6 + $0x794] sm:$0xf0]  ;;  %v3054_v21 = vld [vmem:[#allocation6 + $0x468] sm:$0xf]  ;;  %v3327_v23 = vor.u32 %v3847_v17, %v3326_v16 }
  0xb8   :  { %1888 = vmatpush.bf16.msra.mxu0 %v2495_v34  ;;  %v3779_v24 = vld [vmem:[#allocation6 + $0x474] sm:$0xf0]  ;;  %v3182_v25 = vld [vmem:[#allocation6 + $0x568] sm:$0xf]  ;;  %v3455_v27 = vor.u32 %v3879_v19, %v3454_v18  ;;  %v3665_v19 = vld [vmem:[#allocation6 + $0xec] sm:$0xf] }
  0xb9   :  { %v3811_v26 = vld [vmem:[#allocation6 + $0x574] sm:$0xf0]  ;;  %v3310_v31 = vld [vmem:[#allocation6 + $0x668] sm:$0xf]  ;;  %v3055_v37 = vor.u32 %v3779_v24, %v3054_v21  ;;  %v3697_v21 = vld [vmem:[#allocation6 + $0x1ec] sm:$0xf] }
  0xba   :  { %1901 = vmatpush.bf16.msra.mxu1 %v2623_v39  ;;  %1914 = vmatpush.bf16.msra.mxu2 %v2751_v40  ;;  %v3843_v32 = vld [vmem:[#allocation6 + $0x674] sm:$0xf0]  ;;  %v3438_v34 = vld [vmem:[#allocation6 + $0x768] sm:$0xf]  ;;  %v3183_v39 = vor.u32 %v3811_v26, %v3182_v25  ;;  %v2736_v25 = vld [vmem:[#allocation6 + $0x1f8] sm:$0xf0] }
  0xbb   :  { %1927 = vmatpush.bf16.msra.mxu3 %v2879_v43  ;;  %1889 = vmatmul.bf16.vlgmr.msra.gmra.mxu0 %v4176_v29  ;;  %v3875_v36 = vld [vmem:[#allocation6 + $0x774] sm:$0xf0]  ;;  %v3038_v38 = vld [vmem:[#allocation6 + $0x448] sm:$0xf]  ;;  %v3311_v40 = vor.u32 %v3843_v32, %v3310_v31  ;;  %v385_v43 = vperm.slane %v4210_v33, 0 }
  0xbc   :  { %1933 = vmatpush.bf16.msrb.mxu0 %v3119_v44  ;;  %v3775_v41 = vld [vmem:[#allocation6 + $0x454] sm:$0xf0]  ;;  %v3166_v42 = vld [vmem:[#allocation6 + $0x548] sm:$0xf]  ;;  %v3439_v44 = vor.u32 %v3875_v36, %v3438_v34  ;;  %v3729_v26 = vld [vmem:[#allocation6 + $0x2ec] sm:$0xf] }
  0xbd   :  { %1915 = vmatmul.bf16.vlgmr.msra.gmra.mxu2 %v4174_v28  ;;  %1902 = vmatmul.bf16.vlgmr.msra.gmra.mxu1 %v4180_v35  ;;  %v3839_v48 = vld [vmem:[#allocation6 + $0x654] sm:$0xf0]  ;;  %v3422_v51 = vld [vmem:[#allocation6 + $0x748] sm:$0xf]  ;;  %v3761_v36 = vld [vmem:[#allocation6 + $0x3ec] sm:$0xf] }
  0xbe   :  { %1946 = vmatpush.bf16.msrb.mxu1 %v3247_v45  ;;  %1959 = vmatpush.bf16.msrb.mxu2 %v3375_v47  ;;  %v3807_v45 = vld [vmem:[#allocation6 + $0x554] sm:$0xf0]  ;;  %v3294_v47 = vld [vmem:[#allocation6 + $0x648] sm:$0xf] }
  0xbf   :  { %1972 = vmatpush.bf16.msrb.mxu3 %v3503_v54  ;;  %v3871_v53 = vld [vmem:[#allocation6 + $0x754] sm:$0xf0]  ;;  %v3039_v54 = vor.u32 %v3775_v41, %v3038_v38  ;;  %v3167_v56 = vor.u32 %v3807_v45, %v3166_v42  ;;  %v3295_v57 = vor.u32 %v3839_v48, %v3294_v47  ;;  %v3022_v58 = vld [vmem:[#allocation6 + $0x428] sm:$0xf]  ;;  %v1708_v18 = vpop.f32.mrf.mxu2  ;;  %v2739_v41 = vor.u32 %v3697_v21, %v2736_v25  ;;  %v3693_v45 = vld [vmem:[#allocation6 + $0x1cc] sm:$0xf] }
  0xc0   :  { %1928 = vmatmul.bf16.vlgmr.msra.gmra.mxu3 %v4178_v30  ;;  %1934 = vmatpush.bf16.msrb.mxu0 %v3103_v60  ;;  %v3771_v59 = vld [vmem:[#allocation6 + $0x434] sm:$0xf0]  ;;  %v3150_v60 = vld [vmem:[#allocation6 + $0x528] sm:$0xf]  ;;  %v3681_v25 = vld [vmem:[#allocation6 + $0x16c] sm:$0xf] }
  0xc1   :  { %v3803_v63 = vld [vmem:[#allocation6 + $0x534] sm:$0xf0]  ;;  %v3278_v0 = vld [vmem:[#allocation6 + $0x628] sm:$0xf]  ;;  %v3023_v5 = vor.u32 %v3771_v59, %v3022_v58 }
  0xc2   :  { %1947 = vmatpush.bf16.msrb.mxu1 %v3231_v61  ;;  %1960 = vmatpush.bf16.msrb.mxu2 %v3359_v62  ;;  %v3423_v62 = vor.u32 %v3871_v53, %v3422_v51  ;;  %v3835_v1 = vld [vmem:[#allocation6 + $0x634] sm:$0xf0]  ;;  %v3006_v6 = vld [vmem:[#allocation6 + $0x408] sm:$0xf]  ;;  %v2720_v51 = vld [vmem:[#allocation6 + $0x1d8] sm:$0xf0] }
  0xc3   :  { %1973 = vmatpush.bf16.msrb.mxu3 %v3487_v2  ;;  %v3406_v2 = vld [vmem:[#allocation6 + $0x728] sm:$0xf]  ;;  %v3867_v3 = vld [vmem:[#allocation6 + $0x734] sm:$0xf0]  ;;  %v3725_v53 = vld [vmem:[#allocation6 + $0x2cc] sm:$0xf]  ;;  %v2723_v59 = vor.u32 %v3693_v45, %v2720_v51 }
  0xc4   :  { %1935 = vmatpush.bf16.msrb.mxu0 %v3087_v8  ;;  %v3767_v7 = vld [vmem:[#allocation6 + $0x414] sm:$0xf0]  ;;  %v3134_v11 = vld [vmem:[#allocation6 + $0x508] sm:$0xf]  ;;  %v2528_v45 = vld [vmem:[#allocation6 + $0x58] sm:$0xf0] }
  0xc5   :  { %v3799_v12 = vld [vmem:[#allocation6 + $0x514] sm:$0xf0]  ;;  %v3262_v13 = vld [vmem:[#allocation6 + $0x608] sm:$0xf]  ;;  %v3007_v24 = vor.u32 %v3767_v7, %v3006_v6  ;;  %v2960_v6 = vld [vmem:[#allocation6 + $0x3b8] sm:$0xf0] }
  0xc6   :  { %1948 = vmatpush.bf16.msrb.mxu1 %v3215_v9  ;;  %1961 = vmatpush.bf16.msrb.mxu2 %v3343_v10  ;;  %v3151_v9 = vor.u32 %v3803_v63, %v3150_v60  ;;  %v3279_v10 = vor.u32 %v3835_v1, %v3278_v0  ;;  %v3831_v15 = vld [vmem:[#allocation6 + $0x614] sm:$0xf0]  ;;  %v3390_v16 = vld [vmem:[#allocation6 + $0x708] sm:$0xf]  ;;  %v3135_v32 = vor.u32 %v3799_v12, %v3134_v11  ;;  %v3689_v63 = vld [vmem:[#allocation6 + $0x1ac] sm:$0xf] }
  0xc7   :  { %1974 = vmatpush.bf16.msrb.mxu3 %v3471_v14  ;;  %v3407_v14 = vor.u32 %v3867_v3, %v3406_v2  ;;  %v3863_v17 = vld [vmem:[#allocation6 + $0x714] sm:$0xf0]  ;;  %v3263_v34 = vor.u32 %v3831_v15, %v3262_v13  ;;  %v1710_v58 = vpop.f32.mrf.mxu2  ;;  %v2704_v2 = vld [vmem:[#allocation6 + $0x1b8] sm:$0xf0]  ;;  %v3721_v3 = vld [vmem:[#allocation6 + $0x2ac] sm:$0xf] }
  0xc8   :  { %1936 = vmatpush.bf16.msrb.mxu0 %v3071_v20  ;;  %v2608_v20 = vld [vmem:[#allocation6 + $0xf8] sm:$0xf0]  ;;  %v3685_v12 = vld [vmem:[#allocation6 + $0x18c] sm:$0xf] }
  0xc9   :  { %v2560_v11 = vld [vmem:[#allocation6 + $0x98] sm:$0xf0]  ;;  %v3717_v15 = vld [vmem:[#allocation6 + $0x28c] sm:$0xf] }
  0xca   :  { %1949 = vmatpush.bf16.msrb.mxu1 %v3199_v22  ;;  %1962 = vmatpush.bf16.msrb.mxu2 %v3327_v23  ;;  %v1682_v55 = vpop.f32.mrf.mxu0  ;;  %v1695_v4 = vpop.f32.mrf.mxu1  ;;  %v2656_v51 = vld [vmem:[#allocation6 + $0x158] sm:$0xf0] }
  0xcb   :  { %1975 = vmatpush.bf16.msrb.mxu3 %v3455_v27  ;;  %v1683_v61 = vadd.f32 %v1682_v55, %v385_v43  ;;  %v1721_v23 = vpop.f32.mrf.mxu3  ;;  %v2864_v27 = vld [vmem:[#allocation6 + $0x2f8] sm:$0xf0]  ;;  %v3661_v43 = vld [vmem:[#allocation6 + $0xcc] sm:$0xf] }
  0xcc   :  { %1937 = vmatpush.bf16.msrb.mxu0 %v3055_v37  ;;  %v2992_v37 = vld [vmem:[#allocation6 + $0x3f8] sm:$0xf0]  ;;  %v2867_v42 = vor.u32 %v3729_v26, %v2864_v27  ;;  %v3757_v55 = vld [vmem:[#allocation6 + $0x3cc] sm:$0xf] }
  0xcd   :  { %v1696_v8 = vadd.f32 %v1695_v4, %v1683_v61  ;;  %v2995_v48 = vor.u32 %v3761_v36, %v2992_v37  ;;  %v3657_v61 = vld [vmem:[#allocation6 + $0xac] sm:$0xf]  ;;  %v2832_v4 = vld [vmem:[#allocation6 + $0x2b8] sm:$0xf0] }
  0xce   :  { %1950 = vmatpush.bf16.msrb.mxu1 %v3183_v39  ;;  %1963 = vmatpush.bf16.msrb.mxu2 %v3311_v40  ;;  %v3391_v39 = vor.u32 %v3863_v17, %v3390_v16  ;;  %v2611_v40 = vor.u32 %v3665_v19, %v2608_v20  ;;  %v2816_v16 = vld [vmem:[#allocation6 + $0x298] sm:$0xf0]  ;;  %v3749_v17 = vld [vmem:[#allocation6 + $0x38c] sm:$0xf] }
  0xcf   :  { %1976 = vmatpush.bf16.msrb.mxu3 %v3439_v44  ;;  %v1709_v22 = vadd.f32 %v1708_v18, %v1696_v8  ;;  %v2592_v44 = vld [vmem:[#allocation6 + $0xd8] sm:$0xf0]  ;;  %v2707_v8 = vor.u32 %v3689_v63, %v2704_v2  ;;  %v3745_v37 = vld [vmem:[#allocation6 + $0x36c] sm:$0xf] }
  0xd0   :  { %1938 = vmatpush.bf16.msrb.mxu0 %v3039_v54  ;;  %v2848_v54 = vld [vmem:[#allocation6 + $0x2d8] sm:$0xf0]  ;;  %v3673_v2 = vld [vmem:[#allocation6 + $0x12c] sm:$0xf] }
  0xd1   :  { %v4213_v38 = vadd.f32 %v1721_v23, %v1709_v22  ;;  %v2851_v60 = vor.u32 %v3725_v53, %v2848_v54  ;;  %v2944_v18 = vld [vmem:[#allocation6 + $0x398] sm:$0xf0]  ;;  %v2819_v22 = vor.u32 %v3717_v15, %v2816_v16  ;;  %v3649_v23 = vld [vmem:[#allocation6 + $0x6c] sm:$0xf] }
  0xd2   :  { %1951 = vmatpush.bf16.msrb.mxu1 %v3167_v56  ;;  %1964 = vmatpush.bf16.msrb.mxu2 %v3295_v57  ;;  %v1684_v31 = vpop.f32.mrf.mxu0  ;;  %v1697_v47 = vpop.f32.mrf.mxu1  ;;  %v2976_v56 = vld [vmem:[#allocation6 + $0x3d8] sm:$0xf0]  ;;  %v2595_v57 = vor.u32 %v3661_v43, %v2592_v44  ;;  %v3645_v44 = vld [vmem:[#allocation6 + $0x4c] sm:$0xf] }
  0xd3   :  { %1977 = vmatpush.bf16.msrb.mxu3 %v3423_v62  ;;  %v2576_v62 = vld [vmem:[#allocation6 + $0xb8] sm:$0xf0]  ;;  %v1723_v0 = vpop.f32.mrf.mxu3  ;;  %v2979_v1 = vor.u32 %v3757_v55, %v2976_v56  ;;  %v2947_v31 = vor.u32 %v3749_v17, %v2944_v18  ;;  %v3677_v47 = vld [vmem:[#allocation6 + $0x14c] sm:$0xf] }
  0xd4   :  { %1939 = vmatpush.bf16.msrb.mxu0 %v3023_v5  ;;  %v3753_v5 = vld [vmem:[#allocation6 + $0x3ac] sm:$0xf]  ;;  %v2579_v7 = vor.u32 %v3657_v61, %v2576_v62  ;;  %v2800_v36 = vld [vmem:[#allocation6 + $0x278] sm:$0xf0]  ;;  %v2659_v62 = vor.u32 %v3677_v47, %v2656_v51 }
  0xd5   :  { %v2963_v13 = vor.u32 %v3753_v5, %v2960_v6  ;;  %v3709_v53 = vld [vmem:[#allocation6 + $0x24c] sm:$0xf]  ;;  %v2784_v54 = vld [vmem:[#allocation6 + $0x258] sm:$0xf0] }
  0xd6   :  { %1952 = vmatpush.bf16.msrb.mxu1 %v3151_v9  ;;  %1965 = vmatpush.bf16.msrb.mxu2 %v3279_v10  ;;  %v2835_v9 = vor.u32 %v3721_v3, %v2832_v4  ;;  %v3653_v10 = vld [vmem:[#allocation6 + $0x8c] sm:$0xf]  ;;  %v2912_v58 = vld [vmem:[#allocation6 + $0x358] sm:$0xf0]  ;;  %v2787_v63 = vor.u32 %v3709_v53, %v2784_v54 }
  0xd7   :  { %1978 = vmatpush.bf16.msrb.mxu3 %v3407_v14  ;;  %v2688_v14 = vld [vmem:[#allocation6 + $0x198] sm:$0xf0]  ;;  %v2563_v19 = vor.u32 %v3653_v10, %v2560_v11  ;;  %v3641_v0 = vld [vmem:[#allocation6 + $0x2c] sm:$0xf] }
  0xd8   :  { %1940 = vmatpush.bf16.msrb.mxu0 %v3007_v24  ;;  %v2691_v21 = vor.u32 %v3685_v12, %v2688_v14  ;;  %v2544_v24 = vld [vmem:[#allocation6 + $0x78] sm:$0xf0]  ;;  %v3705_v6 = vld [vmem:[#allocation6 + $0x22c] sm:$0xf] }
  0xd9   :  { %v2640_v5 = vld [vmem:[#allocation6 + $0x138] sm:$0xf0]  ;;  %v3637_v11 = vld [vmem:[#allocation6 + $0xc] sm:$0xf] }
  0xda   :  { %1953 = vmatpush.bf16.msrb.mxu1 %v3135_v32  ;;  %1966 = vmatpush.bf16.msrb.mxu2 %v3263_v34  ;;  %v1734_v20 = vpop.f32.mrf.mxu0  ;;  %v2672_v32 = vld [vmem:[#allocation6 + $0x178] sm:$0xf0]  ;;  %v3713_v34 = vld [vmem:[#allocation6 + $0x26c] sm:$0xf] }
  0xdb   :  { %1979 = vmatpush.bf16.msrb.mxu3 %v3391_v39  ;;  %1941 = vmatmul.bf16.vlgmr.msrb.gmra.mxu0 %v4188_v49  ;;  %v1735_v26 = vadd.f32 %v1734_v20, %v4213_v38  ;;  %v2928_v39 = vld [vmem:[#allocation6 + $0x378] sm:$0xf0]  ;;  %v2803_v43 = vor.u32 %v3713_v34, %v2800_v36  ;;  %v3669_v15 = vld [vmem:[#allocation6 + $0x10c] sm:$0xf] }
  0xdc   :  { %1985 = vmatpush.bf16.msra.mxu0 %v2611_v40  ;;  %v1747_v27 = vpop.f32.mrf.mxu1  ;;  %v2931_v38 = vor.u32 %v3745_v37, %v2928_v39  ;;  %v2496_v12 = vld [vmem:[#allocation6 + $0x18] sm:$0xf0]  ;;  %v3701_v17 = vld [vmem:[#allocation6 + $0x20c] sm:$0xf] }
  0xdd   :  { %1967 = vmatmul.bf16.vlgmr.msrb.gmra.mxu2 %v4186_v46  ;;  %1954 = vmatmul.bf16.vlgmr.msrb.gmra.mxu1 %v4192_v52  ;;  %v1748_v40 = vadd.f32 %v1747_v27, %v1735_v26  ;;  %v2624_v16 = vld [vmem:[#allocation6 + $0x118] sm:$0xf0]  ;;  %v3825_v26 = vld [vmem:[#allocation6 + $0x5ec] sm:$0xf]  ;;  %v2499_v27 = vor.u32 %v3637_v11, %v2496_v12 }
  0xde   :  { %1998 = vmatpush.bf16.msra.mxu1 %v2739_v41  ;;  %2011 = vmatpush.bf16.msra.mxu2 %v2867_v42  ;;  %v2547_v41 = vor.u32 %v3649_v23, %v2544_v24  ;;  %v2675_v42 = vor.u32 %v3681_v25, %v2672_v32  ;;  %v2752_v20 = vld [vmem:[#allocation6 + $0x218] sm:$0xf0]  ;;  %v3793_v24 = vld [vmem:[#allocation6 + $0x4ec] sm:$0xf]  ;;  %v2627_v36 = vor.u32 %v3669_v15, %v2624_v16 }
  0xdf   :  { %2024 = vmatpush.bf16.msra.mxu3 %v2995_v48  ;;  %v3120_v25 = vld [vmem:[#allocation6 + $0x4f8] sm:$0xf0]  ;;  %v3857_v32 = vld [vmem:[#allocation6 + $0x6ec] sm:$0xf]  ;;  %v2755_v37 = vor.u32 %v3701_v17, %v2752_v20 }
  0xe0   :  { %1980 = vmatmul.bf16.vlgmr.msrb.gmra.mxu3 %v4190_v50  ;;  %1986 = vmatpush.bf16.msra.mxu0 %v2595_v57  ;;  %v1760_v48 = vpop.f32.mrf.mxu2  ;;  %v3741_v57 = vld [vmem:[#allocation6 + $0x34c] sm:$0xf]  ;;  %v3376_v34 = vld [vmem:[#allocation6 + $0x6f8] sm:$0xf0] }
  0xe1   :  { %v1761_v55 = vadd.f32 %v1760_v48, %v1748_v40  ;;  %v2915_v4 = vor.u32 %v3741_v57, %v2912_v58  ;;  %v3889_v39 = vld [vmem:[#allocation6 + $0x7ec] sm:$0xf]  ;;  %v3504_v40 = vld [vmem:[#allocation6 + $0x7f8] sm:$0xf0] }
  0xe2   :  { %1999 = vmatpush.bf16.msra.mxu1 %v2723_v59  ;;  %2012 = vmatpush.bf16.msra.mxu2 %v2851_v60  ;;  %v2531_v59 = vor.u32 %v3645_v44, %v2528_v45  ;;  %v1736_v61 = vpop.f32.mrf.mxu0  ;;  %v3379_v44 = vor.u32 %v3857_v32, %v3376_v34  ;;  %v3789_v45 = vld [vmem:[#allocation6 + $0x4cc] sm:$0xf]  ;;  %v3104_v47 = vld [vmem:[#allocation6 + $0x4d8] sm:$0xf0] }
  0xe3   :  { %2025 = vmatpush.bf16.msra.mxu3 %v2979_v1  ;;  %v1773_v56 = vpop.f32.mrf.mxu3  ;;  %v2512_v1 = vld [vmem:[#allocation6 + $0x38] sm:$0xf0]  ;;  %v3821_v48 = vld [vmem:[#allocation6 + $0x5cc] sm:$0xf]  ;;  %v3107_v57 = vor.u32 %v3789_v45, %v3104_v47 }
  0xe4   :  { %1987 = vmatpush.bf16.msra.mxu0 %v2579_v7  ;;  %v4220_v60 = vadd.f32 %v1773_v56, %v1761_v55  ;;  %v1749_v3 = vpop.f32.mrf.mxu1  ;;  %v2768_v7 = vld [vmem:[#allocation6 + $0x238] sm:$0xf0]  ;;  %v2515_v10 = vor.u32 %v3641_v0, %v2512_v1  ;;  %v3853_v53 = vld [vmem:[#allocation6 + $0x6cc] sm:$0xf] }
  0xe5   :  { %v2771_v14 = vor.u32 %v3705_v6, %v2768_v7  ;;  %v3232_v51 = vld [vmem:[#allocation6 + $0x5d8] sm:$0xf0]  ;;  %v3885_v55 = vld [vmem:[#allocation6 + $0x7cc] sm:$0xf] }
  0xe6   :  { %2000 = vmatpush.bf16.msra.mxu1 %v2707_v8  ;;  %2013 = vmatpush.bf16.msra.mxu2 %v2835_v9  ;;  %v3737_v8 = vld [vmem:[#allocation6 + $0x32c] sm:$0xf]  ;;  %v2896_v9 = vld [vmem:[#allocation6 + $0x338] sm:$0xf0]  ;;  %v3235_v58 = vor.u32 %v3821_v48, %v3232_v51 }
  0xe7   :  { %2026 = vmatpush.bf16.msra.mxu3 %v2963_v13  ;;  %v2643_v13 = vor.u32 %v3673_v2, %v2640_v5  ;;  %v3360_v54 = vld [vmem:[#allocation6 + $0x6d8] sm:$0xf0]  ;;  %v3785_v61 = vld [vmem:[#allocation6 + $0x4ac] sm:$0xf] }
  0xe8   :  { %1988 = vmatpush.bf16.msra.mxu0 %v2563_v19  ;;  %v1762_v18 = vpop.f32.mrf.mxu2  ;;  %v2899_v19 = vor.u32 %v3737_v8, %v2896_v9  ;;  %v3488_v56 = vld [vmem:[#allocation6 + $0x7d8] sm:$0xf0]  ;;  %v3849_v2 = vld [vmem:[#allocation6 + $0x6ac] sm:$0xf] }
  0xe9   :  { %v3491_v0 = vor.u32 %v3885_v55, %v3488_v56  ;;  %v3216_v1 = vld [vmem:[#allocation6 + $0x5b8] sm:$0xf0]  ;;  %v3781_v9 = vld [vmem:[#allocation6 + $0x48c] sm:$0xf] }
  0xea   :  { %2001 = vmatpush.bf16.msra.mxu1 %v2691_v21  ;;  %2014 = vmatpush.bf16.msra.mxu2 %v2819_v22  ;;  %v3733_v21 = vld [vmem:[#allocation6 + $0x30c] sm:$0xf]  ;;  %v2880_v22 = vld [vmem:[#allocation6 + $0x318] sm:$0xf0] }
  0xeb   :  { %2027 = vmatpush.bf16.msra.mxu3 %v2947_v31  ;;  %v1775_v23 = vpop.f32.mrf.mxu3  ;;  %v3248_v31 = vld [vmem:[#allocation6 + $0x5f8] sm:$0xf0]  ;;  %v3877_v15 = vld [vmem:[#allocation6 + $0x78c] sm:$0xf] }
  0xec   :  { %1989 = vmatpush.bf16.msra.mxu0 %v2547_v41  ;;  %v2883_v41 = vor.u32 %v3733_v21, %v2880_v22  ;;  %v3344_v3 = vld [vmem:[#allocation6 + $0x6b8] sm:$0xf0]  ;;  %v3777_v18 = vld [vmem:[#allocation6 + $0x46c] sm:$0xf] }
  0xed   :  { %v3472_v5 = vld [vmem:[#allocation6 + $0x7b8] sm:$0xf0]  ;;  %v3347_v8 = vor.u32 %v3849_v2, %v3344_v3  ;;  %v3809_v20 = vld [vmem:[#allocation6 + $0x56c] sm:$0xf]  ;;  %v386_v2 = vperm.slane %v4210_v33, 1 }
  0xee   :  { %2002 = vmatpush.bf16.msra.mxu1 %v2675_v42  ;;  %2015 = vmatpush.bf16.msra.mxu2 %v2803_v43  ;;  %v3123_v42 = vor.u32 %v3793_v24, %v3120_v25  ;;  %v3251_v43 = vor.u32 %v3825_v26, %v3248_v31  ;;  %v3200_v12 = vld [vmem:[#allocation6 + $0x598] sm:$0xf0]  ;;  %v3841_v24 = vld [vmem:[#allocation6 + $0x66c] sm:$0xf] }
  0xef   :  { %2028 = vmatpush.bf16.msra.mxu3 %v2931_v38  ;;  %v3507_v38 = vor.u32 %v3889_v39, %v3504_v40  ;;  %v3184_v23 = vld [vmem:[#allocation6 + $0x578] sm:$0xf0]  ;;  %v3873_v26 = vld [vmem:[#allocation6 + $0x76c] sm:$0xf] }
  0xf0   :  { %1990 = vmatpush.bf16.msra.mxu0 %v2531_v59  ;;  %v3363_v59 = vor.u32 %v3853_v53, %v3360_v54  ;;  %v3312_v25 = vld [vmem:[#allocation6 + $0x678] sm:$0xf0]  ;;  %v3187_v32 = vor.u32 %v3809_v20, %v3184_v23  ;;  %v3805_v39 = vld [vmem:[#allocation6 + $0x54c] sm:$0xf]  ;;  %v3898_v23 = vld [vmem:[#allocation9 + $0x30] sm:$0xff] }
  0xf1   :  { %v3315_v34 = vor.u32 %v3841_v24, %v3312_v25  ;;  %v3869_v47 = vld [vmem:[#allocation6 + $0x74c] sm:$0xf]  ;;  %v3424_v48 = vld [vmem:[#allocation6 + $0x758] sm:$0xf0] }
  0xf2   :  { %2003 = vmatpush.bf16.msra.mxu1 %v2659_v62  ;;  %2016 = vmatpush.bf16.msra.mxu2 %v2787_v63  ;;  %v3088_v62 = vld [vmem:[#allocation6 + $0x4b8] sm:$0xf0]  ;;  %v3817_v63 = vld [vmem:[#allocation6 + $0x5ac] sm:$0xf] }
  0xf3   :  { %2029 = vmatpush.bf16.msra.mxu3 %v2915_v4  ;;  %v3881_v4 = vld [vmem:[#allocation6 + $0x7ac] sm:$0xf]  ;;  %v3091_v6 = vor.u32 %v3785_v61, %v3088_v62  ;;  %v3219_v7 = vor.u32 %v3817_v63, %v3216_v1  ;;  %v3024_v56 = vld [vmem:[#allocation6 + $0x438] sm:$0xf0] }
  0xf4   :  { %1991 = vmatpush.bf16.msra.mxu0 %v2515_v10  ;;  %v3072_v10 = vld [vmem:[#allocation6 + $0x498] sm:$0xf0]  ;;  %v3475_v11 = vor.u32 %v3881_v4, %v3472_v5  ;;  %v3769_v55 = vld [vmem:[#allocation6 + $0x42c] sm:$0xf] }
  0xf5   :  { %v3152_v61 = vld [vmem:[#allocation6 + $0x538] sm:$0xf0]  ;;  %v3833_v62 = vld [vmem:[#allocation6 + $0x62c] sm:$0xf]  ;;  %v3027_v3 = vor.u32 %v3769_v55, %v3024_v56 }
  0xf6   :  { %2004 = vmatpush.bf16.msra.mxu1 %v2643_v13  ;;  %2017 = vmatpush.bf16.msra.mxu2 %v2771_v14  ;;  %v3845_v13 = vld [vmem:[#allocation6 + $0x68c] sm:$0xf]  ;;  %v3328_v14 = vld [vmem:[#allocation6 + $0x698] sm:$0xf0] }
  0xf7   :  { %2030 = vmatpush.bf16.msra.mxu3 %v2899_v19  ;;  %v3331_v17 = vor.u32 %v3845_v13, %v3328_v14  ;;  %v3056_v19 = vld [vmem:[#allocation6 + $0x478] sm:$0xf0]  ;;  %v3861_v14 = vld [vmem:[#allocation6 + $0x70c] sm:$0xf] }
  0xf8   :  { %1992 = vmatpush.bf16.msra.mxu0 %v2499_v27  ;;  %v4226_v16 = vpop.f32.mrf.mxu0  ;;  %v3440_v27 = vld [vmem:[#allocation6 + $0x778] sm:$0xf0]  ;;  %v3059_v31 = vor.u32 %v3777_v18, %v3056_v19 }
  0xf9   :  { %v3280_v63 = vld [vmem:[#allocation6 + $0x638] sm:$0xf0] }
  0xfa   :  { %2005 = vmatpush.bf16.msra.mxu1 %v2627_v36  ;;  %2018 = vmatpush.bf16.msra.mxu2 %v2755_v37  ;;  %v4228_v21 = vpop.f32.mrf.mxu1  ;;  %v3773_v36 = vld [vmem:[#allocation6 + $0x44c] sm:$0xf]  ;;  %v3040_v37 = vld [vmem:[#allocation6 + $0x458] sm:$0xf0]  ;;  %v3283_v5 = vor.u32 %v3833_v62, %v3280_v63 }
  0xfb   :  { %2031 = vmatpush.bf16.msra.mxu3 %v2883_v41  ;;  %1993 = vmatmul.bf16.vlgmr.msra.gmra.mxu0 %v4176_v29  ;;  %v3456_v29 = vld [vmem:[#allocation6 + $0x798] sm:$0xf0]  ;;  %v3443_v41 = vor.u32 %v3873_v26, %v3440_v27  ;;  %v3905_v27 = vld [vmem:[#allocation9 + $0x68] sm:$0xff] }
  0xfc   :  { %2037 = vmatpush.bf16.msrb.mxu0 %v3123_v42  ;;  %v3459_v22 = vor.u32 %v3877_v15, %v3456_v29  ;;  %v3168_v42 = vld [vmem:[#allocation6 + $0x558] sm:$0xf0]  ;;  %v1787_v29 = vadd.f32 %v4226_v16, %v386_v2  ;;  %v3906_v16 = vld [vmem:[#allocation9 + $0x70] sm:$0xff] }
  0xfd   :  { %2019 = vmatmul.bf16.vlgmr.msra.gmra.mxu2 %v4174_v28  ;;  %2006 = vmatmul.bf16.vlgmr.msra.gmra.mxu1 %v4180_v35  ;;  %v3813_v28 = vld [vmem:[#allocation6 + $0x58c] sm:$0xf]  ;;  %v3171_v53 = vor.u32 %v3805_v39, %v3168_v42  ;;  %v3408_v1 = vld [vmem:[#allocation6 + $0x738] sm:$0xf0]  ;;  %v3894_v42 = vld [vmem:[#allocation9 + $0x10] sm:$0xff] }
  0xfe   :  { %2050 = vmatpush.bf16.msrb.mxu1 %v3251_v43  ;;  %2063 = vmatpush.bf16.msrb.mxu2 %v3379_v44  ;;  %v3203_v35 = vor.u32 %v3813_v28, %v3200_v12  ;;  %v3837_v43 = vld [vmem:[#allocation6 + $0x64c] sm:$0xf]  ;;  %v3296_v44 = vld [vmem:[#allocation6 + $0x658] sm:$0xf0]  ;;  %v3910_v2 = vld [vmem:[#allocation9 + $0x90] sm:$0xff] }
  0xff   :  { %2076 = vmatpush.bf16.msrb.mxu3 %v3507_v38  ;;  %v3043_v38 = vor.u32 %v3773_v36, %v3040_v37  ;;  %v3299_v54 = vor.u32 %v3837_v43, %v3296_v44  ;;  %v3136_v28 = vld [vmem:[#allocation6 + $0x518] sm:$0xf0]  ;;  %v3914_v37 = vld [vmem:[#allocation9 + $0xb0] sm:$0xff] }
 0x100   :  { %2032 = vmatmul.bf16.vlgmr.msra.gmra.mxu3 %v4178_v30  ;;  %2038 = vmatpush.bf16.msrb.mxu0 %v3107_v57  ;;  %v3075_v30 = vor.u32 %v3781_v9, %v3072_v10  ;;  %v4230_v40 = vpop.f32.mrf.mxu2  ;;  %v1788_v51 = vpop.f32.mrf.mxu0  ;;  %v3801_v57 = vld [vmem:[#allocation6 + $0x52c] sm:$0xf]  ;;  %v3264_v12 = vld [vmem:[#allocation6 + $0x618] sm:$0xf0] }
 0x101   :  { %v3155_v4 = vor.u32 %v3801_v57, %v3152_v61  ;;  %v3392_v15 = vld [vmem:[#allocation6 + $0x718] sm:$0xf0]  ;;  %v3893_v51 = vld [vmem:[#allocation9 + $0x8] sm:$0xff]  ;;  %v3900_v61 = vld [vmem:[#allocation9 + $0x40] sm:$0xff] }
 0x102   :  { %2051 = vmatpush.bf16.msrb.mxu1 %v3235_v58  ;;  %2064 = vmatpush.bf16.msrb.mxu2 %v3363_v59  ;;  %v1801_v58 = vpop.f32.mrf.mxu1  ;;  %v3427_v59 = vor.u32 %v3869_v47, %v3424_v48  ;;  %v3395_v18 = vor.u32 %v3861_v14, %v3392_v15  ;;  %v3899_v19 = vld [vmem:[#allocation9 + $0x38] sm:$0xff]  ;;  %v3902_v47 = vld [vmem:[#allocation9 + $0x50] sm:$0xff] }
 0x103   :  { %2077 = vmatpush.bf16.msrb.mxu3 %v3491_v0  ;;  %v4232_v45 = vpop.f32.mrf.mxu3  ;;  %v3865_v0 = vld [vmem:[#allocation6 + $0x72c] sm:$0xf]  ;;  %v3907_v20 = vld [vmem:[#allocation9 + $0x78] sm:$0xff]  ;;  %v3892_v58 = vld [vmem:[#allocation9] sm:$0xff] }
 0x104   :  { %2039 = vmatpush.bf16.msrb.mxu0 %v3091_v6  ;;  %v3765_v6 = vld [vmem:[#allocation6 + $0x40c] sm:$0xf]  ;;  %v3411_v10 = vor.u32 %v3865_v0, %v3408_v1  ;;  %v3915_v24 = vld [vmem:[#allocation9 + $0xb8] sm:$0xff] }
 0x106   :  { %2052 = vmatpush.bf16.msrb.mxu1 %v3219_v7  ;;  %2065 = vmatpush.bf16.msrb.mxu2 %v3347_v8  ;;  %v3008_v7 = vld [vmem:[#allocation6 + $0x418] sm:$0xf0]  ;;  %v3797_v8 = vld [vmem:[#allocation6 + $0x50c] sm:$0xf] }
 0x107   :  { %2078 = vmatpush.bf16.msrb.mxu3 %v3475_v11  ;;  %v3829_v11 = vld [vmem:[#allocation6 + $0x60c] sm:$0xf] }
 0x108   :  { %2040 = vmatpush.bf16.msrb.mxu0 %v3075_v30  ;;  %v1814_v9 = vpop.f32.mrf.mxu2  ;;  %v3011_v30 = vor.u32 %v3765_v6, %v3008_v7 }
 0x10a   :  { %2053 = vmatpush.bf16.msrb.mxu1 %v3203_v35  ;;  %2066 = vmatpush.bf16.msrb.mxu2 %v3331_v17  ;;  %v3139_v35 = vor.u32 %v3797_v8, %v3136_v28  ;;  %v3267_v17 = vor.u32 %v3829_v11, %v3264_v12  ;;  %v3908_v8 = vld [vmem:[#allocation9 + $0x80] sm:$0xff] }
 0x10b   :  { %2079 = vmatpush.bf16.msrb.mxu3 %v3459_v22  ;;  %v1827_v13 = vpop.f32.mrf.mxu3  ;;  %v1800_v22 = vadd.f32 %v4228_v21, %v1787_v29  ;;  %v3897_v21 = vld [vmem:[#allocation9 + $0x28] sm:$0xff] }
 0x10c   :  { %2041 = vmatpush.bf16.msrb.mxu0 %v3059_v31  ;;  %v3896_v31 = vld [vmem:[#allocation9 + $0x20] sm:$0xff] }
 0x10d   :  { %v1813_v25 = vadd.f32 %v4230_v40, %v1800_v22 }
 0x10e   :  { %2054 = vmatpush.bf16.msrb.mxu1 %v3187_v32  ;;  %2067 = vmatpush.bf16.msrb.mxu2 %v3315_v34 }
 0x10f   :  { %2080 = vmatpush.bf16.msrb.mxu3 %v3443_v41  ;;  %v1826_v26 = vadd.f32 %v4232_v45, %v1813_v25  ;;  %v3913_v41 = vld [vmem:[#allocation9 + $0xa8] sm:$0xff]  ;;  %v3912_v45 = vld [vmem:[#allocation9 + $0xa0] sm:$0xff] }
 0x110   :  { %2042 = vmatpush.bf16.msrb.mxu0 %v3043_v38 }
 0x112   :  { %2055 = vmatpush.bf16.msrb.mxu1 %v3171_v53  ;;  %2068 = vmatpush.bf16.msrb.mxu2 %v3299_v54  ;;  %v3911_v53 = vld [vmem:[#allocation9 + $0x98] sm:$0xff]  ;;  %v3901_v54 = vld [vmem:[#allocation9 + $0x48] sm:$0xff] }
 0x113   :  { %2081 = vmatpush.bf16.msrb.mxu3 %v3427_v59  ;;  %v2089_v59 = vmax.f32 %v4220_v60, 0.0  ;;  %v387_v60 = vperm.slane %v4210_v33, 2 }
 0x114   :  { %2043 = vmatpush.bf16.msrb.mxu0 %v3027_v3 }
 0x115   :  { %v2093_v63 = vpack.c.bf16 %v2089_v59, %v2089_v59 }
 0x116   :  { %2056 = vmatpush.bf16.msrb.mxu1 %v3155_v4  ;;  %2069 = vmatpush.bf16.msrb.mxu2 %v3283_v5  ;;  %v3909_v5 = vld [vmem:[#allocation9 + $0x88] sm:$0xff] }
 0x117   :  { %2082 = vmatpush.bf16.msrb.mxu3 %v3411_v10 }
 0x118   :  { %2044 = vmatpush.bf16.msrb.mxu0 %v3011_v30  ;;  %v1838_v32 = vpop.f32.mrf.mxu0 }
 0x119   :  { %v1839_v34 = vadd.f32 %v1838_v32, %v1826_v26  ;;  %v3919_v32 = vld [vmem:[#allocation9 + $0xd8] sm:$0xff] }
 0x11a   :  { %2057 = vmatpush.bf16.msrb.mxu1 %v3139_v35  ;;  %2070 = vmatpush.bf16.msrb.mxu2 %v3267_v17  ;;  %v1851_v36 = vpop.f32.mrf.mxu1 }
 0x11b   :  { %2083 = vmatpush.bf16.msrb.mxu3 %v3395_v18  ;;  %2045 = vmatmul.bf16.vlgmr.msrb.gmra.mxu0 %v4188_v49  ;;  %v3904_v49 = vld [vmem:[#allocation9 + $0x60] sm:$0xff] }
 0x11c   :  { %2357 = vmatpush.bf16.msra.mxu0 %v3899_v19  ;;  %v3923_v19 = vld [vmem:[#allocation9 + $0xf8] sm:$0xff] }
 0x11d   :  { %2058 = vmatmul.bf16.vlgmr.msrb.gmra.mxu1 %v4192_v52  ;;  %2071 = vmatmul.bf16.vlgmr.msrb.gmra.mxu2 %v4186_v46  ;;  %v3895_v46 = vld [vmem:[#allocation9 + $0x18] sm:$0xff]  ;;  %v1852_v52 = vadd.f32 %v1851_v36, %v1839_v34 }
 0x11e   :  { %2370 = vmatpush.bf16.msra.mxu1 %v3907_v20  ;;  %2084 = vmatmul.bf16.vlgmr.msrb.gmra.mxu3 %v4190_v50  ;;  %v3903_v50 = vld [vmem:[#allocation9 + $0x58] sm:$0xff] }
 0x11f   :  { %2383 = vmatpush.bf16.msra.mxu2 %v3915_v24  ;;  %2396 = vmatpush.bf16.msra.mxu3 %v3923_v19 }
 0x120   :  { %2358 = vmatpush.bf16.msra.mxu0 %v3898_v23  ;;  %v1864_v39 = vpop.f32.mrf.mxu2  ;;  %v1840_v44 = vpop.f32.mrf.mxu0  ;;  %v3922_v23 = vld [vmem:[#allocation9 + $0xf0] sm:$0xff] }
 0x121   :  { %v1865_v43 = vadd.f32 %v1864_v39, %v1852_v52  ;;  %v3916_v39 = vld [vmem:[#allocation9 + $0xc0] sm:$0xff] }
 0x122   :  { %2371 = vmatpush.bf16.msra.mxu1 %v3906_v16  ;;  %v1853_v48 = vpop.f32.mrf.mxu1 }
 0x123   :  { %2384 = vmatpush.bf16.msra.mxu2 %v3914_v37  ;;  %v1877_v40 = vpop.f32.mrf.mxu3  ;;  %2397 = vmatpush.bf16.msra.mxu3 %v3922_v23  ;;  %v3917_v37 = vld [vmem:[#allocation9 + $0xc8] sm:$0xff] }
 0x124   :  { %2359 = vmatpush.bf16.msra.mxu0 %v3897_v21  ;;  %v1878_v38 = vadd.f32 %v1877_v40, %v1865_v43  ;;  %v3921_v21 = vld [vmem:[#allocation9 + $0xe8] sm:$0xff] }
 0x126   :  { %2372 = vmatpush.bf16.msra.mxu1 %v3905_v27  ;;  %v2090_v57 = vmax.f32 %v1878_v38, 0.0 }
 0x127   :  { %2385 = vmatpush.bf16.msra.mxu2 %v3913_v41  ;;  %2398 = vmatpush.bf16.msra.mxu3 %v3921_v21  ;;  %v388_v41 = vperm.slane %v4210_v33, 3 }
 0x128   :  { %2360 = vmatpush.bf16.msra.mxu0 %v3896_v31  ;;  %v1866_v55 = vpop.f32.mrf.mxu2  ;;  %v2094_v62 = vpack.c.bf16 %v2090_v57, %v2090_v57  ;;  %v3920_v31 = vld [vmem:[#allocation9 + $0xe0] sm:$0xff] }
 0x12a   :  { %2373 = vmatpush.bf16.msra.mxu1 %v3904_v49  ;;  %v3918_v49 = vld [vmem:[#allocation9 + $0xd0] sm:$0xff] }
 0x12b   :  { %2386 = vmatpush.bf16.msra.mxu2 %v3912_v45  ;;  %v1879_v56 = vpop.f32.mrf.mxu3  ;;  %2399 = vmatpush.bf16.msra.mxu3 %v3920_v31 }
 0x12c   :  { %2361 = vmatpush.bf16.msra.mxu0 %v3895_v46 }
 0x12e   :  { %2374 = vmatpush.bf16.msra.mxu1 %v3903_v50 }
 0x12f   :  { %2387 = vmatpush.bf16.msra.mxu2 %v3911_v53  ;;  %2400 = vmatpush.bf16.msra.mxu3 %v3919_v32 }
 0x130   :  { %2362 = vmatpush.bf16.msra.mxu0 %v3894_v42 }
 0x132   :  { %2375 = vmatpush.bf16.msra.mxu1 %v3902_v47 }
 0x133   :  { %2388 = vmatpush.bf16.msra.mxu2 %v3910_v2  ;;  %2401 = vmatpush.bf16.msra.mxu3 %v3918_v49 }
 0x134   :  { %2363 = vmatpush.bf16.msra.mxu0 %v3893_v51 }
 0x136   :  { %2376 = vmatpush.bf16.msra.mxu1 %v3901_v54 }
 0x137   :  { %2389 = vmatpush.bf16.msra.mxu2 %v3909_v5  ;;  %2402 = vmatpush.bf16.msra.mxu3 %v3917_v37 }
 0x138   :  { %2364 = vmatpush.bf16.msra.mxu0 %v3892_v58  ;;  %v1890_v0 = vpop.f32.mrf.mxu0 }
 0x139   :  { %v1891_v28 = vadd.f32 %v1890_v0, %v387_v60 }
 0x13a   :  { %2377 = vmatpush.bf16.msra.mxu1 %v3900_v61  ;;  %v1903_v1 = vpop.f32.mrf.mxu1 }
 0x13b   :  { %2365 = vmatmul.bf16.vlgmr.msra.gmra.mxu0 %v2093_v63  ;;  %2390 = vmatpush.bf16.msra.mxu2 %v3908_v8  ;;  %v1904_v11 = vadd.f32 %v1903_v1, %v1891_v28  ;;  %v3937_v1 = vld [vmem:[%s4259_s4] ss:$0 sm:$0xff]  ;;  %s4117_s4 = smov [#allocation12]  }
 0x13c   :  { %2403 = vmatpush.bf16.msra.mxu3 %v3916_v39  ;;  %s2455_s27 = sshll.u32 %s4117_s4, 4  ;;  %s2456_s27 = int_to_ptr.vmem [resolvable:$true] %s2455_s27 }
 0x13d   :  { %2378 = vmatmul.bf16.vlgmr.msra.gmra.mxu1 %v2094_v62 }
 0x140   :  { %v1916_v3 = vpop.f32.mrf.mxu2  ;;  %v1892_v6 = vpop.f32.mrf.mxu0 }
 0x141   :  { %v1917_v12 = vadd.f32 %v1916_v3, %v1904_v11 }
 0x142   :  { %v1905_v7 = vpop.f32.mrf.mxu1 }
 0x143   :  { %v1929_v4 = vpop.f32.mrf.mxu3 }
 0x144   :  { %v1930_v13 = vadd.f32 %v1929_v4, %v1917_v12 }
 0x148   :  { %v1918_v9 = vpop.f32.mrf.mxu2 }
 0x14b   :  { %v1931_v10 = vpop.f32.mrf.mxu3 }
 0x158   :  { %v1942_v14 = vpop.f32.mrf.mxu0 }
 0x159   :  { %v1943_v15 = vadd.f32 %v1942_v14, %v1930_v13 }
 0x15a   :  { %v1955_v29 = vpop.f32.mrf.mxu1 }
 0x15b   :  { %v1956_v30 = vadd.f32 %v1955_v29, %v1943_v15 }
 0x160   :  { %v1968_v35 = vpop.f32.mrf.mxu2  ;;  %v1944_v22 = vpop.f32.mrf.mxu0 }
 0x161   :  { %v1969_v17 = vadd.f32 %v1968_v35, %v1956_v30  ;;  %v2429_v30 = vlaneseq }
 0x162   :  { %v1957_v24 = vpop.f32.mrf.mxu1 }
 0x163   :  { %v1981_v18 = vpop.f32.mrf.mxu3  ;;  %v2434_v19 = vand.u32 127, %v2429_v30 }
 0x164   :  { %v1982_v20 = vadd.f32 %v1981_v18, %v1969_v17  ;;  %v2410_v17 = vld [vmem:[#allocation11] sm:$0xff]  ;;  %v2430_v18 = vshrl.u32 %v2429_v30, 7 }
 0x165   :  { %vm2436_vm1 = vcmp.lt.s32.totalorder %v2434_v19, 56 }
 0x166   :  { %v2091_v16 = vmax.f32 %v1982_v20, 0.0  ;;  %vm2435_vm0 = vcmp.lt.s32.totalorder %v2430_v18, 2 }
 0x167   :  { %vm2437_vm3 = vmand %vm2435_vm0, %vm2436_vm1 }
 0x168   :  { %v2095_v25 = vpack.c.bf16 %v2091_v16, %v2091_v16  ;;  %v1970_v26 = vpop.f32.mrf.mxu2 }
 0x16a   :  { %2391 = vmatmul.bf16.vlgmr.msra.gmra.mxu2 %v2095_v25 }
 0x16b   :  { %v1983_v27 = vpop.f32.mrf.mxu3 }
 0x178   :  { %v1994_v34 = vpop.f32.mrf.mxu0 }
 0x179   :  { %v1995_v44 = vadd.f32 %v1994_v34, %v388_v41 }
 0x17a   :  { %v2007_v36 = vpop.f32.mrf.mxu1 }
 0x17b   :  { %v2008_v45 = vadd.f32 %v2007_v36, %v1995_v44 }
 0x180   :  { %v2020_v46 = vpop.f32.mrf.mxu2  ;;  %v1996_v50 = vpop.f32.mrf.mxu0 }
 0x181   :  { %v2021_v47 = vadd.f32 %v2020_v46, %v2008_v45 }
 0x182   :  { %v2009_v40 = vpop.f32.mrf.mxu1 }
 0x183   :  { %v2033_v52 = vpop.f32.mrf.mxu3 }
 0x184   :  { %v2034_v48 = vadd.f32 %v2033_v52, %v2021_v47 }
 0x188   :  { %v2022_v42 = vpop.f32.mrf.mxu2 }
 0x18b   :  { %v2035_v43 = vpop.f32.mrf.mxu3 }
 0x198   :  { %v2046_v38 = vpop.f32.mrf.mxu0 }
 0x199   :  { %v2047_v53 = vadd.f32 %v2046_v38, %v2034_v48 }
 0x19a   :  { %v2059_v51 = vpop.f32.mrf.mxu1 }
 0x19b   :  { %v2060_v54 = vadd.f32 %v2059_v51, %v2047_v53 }
 0x1a0   :  { %v2072_v55 = vpop.f32.mrf.mxu2  ;;  %v2048_v58 = vpop.f32.mrf.mxu0 }
 0x1a1   :  { %v2073_v56 = vadd.f32 %v2072_v55, %v2060_v54  ;;  %v2085_v57 = vpop.f32.mrf.mxu3 }
 0x1a2   :  { %v2061_v59 = vpop.f32.mrf.mxu1 }
 0x1a3   :  { %v2086_v61 = vadd.f32 %v2085_v57, %v2073_v56 }
 0x1a5   :  { %v2092_v62 = vmax.f32 %v2086_v61, 0.0 }
 0x1a7   :  { %v2096_v63 = vpack.c.bf16 %v2092_v62, %v2092_v62 }
 0x1a8   :  { %v2074_v0 = vpop.f32.mrf.mxu2 }
 0x1a9   :  { %v2087_v33 = vpop.f32.mrf.mxu3  ;;  %2404 = vmatmul.bf16.vlgmr.msra.gmra.mxu3 %v2096_v63 }
 0x1b8   :  { %v2366_v2 = vpop.f32.mrf.mxu0 }
 0x1b9   :  { %v2367_v3 = vadd.f32 %v3937_v1, %v2366_v2 }
 0x1ba   :  { %v2379_v4 = vpop.f32.mrf.mxu1 }
 0x1bb   :  { %v2380_v5 = vadd.f32 %v2379_v4, %v2367_v3 }
 0x1c0   :  { %v2368_v6 = vpop.f32.mrf.mxu0 }
 0x1c2   :  { %v2381_v7 = vpop.f32.mrf.mxu1 }
 0x1ed   :  { %v2392_v8 = vpop.f32.mrf.mxu2 }
 0x1ee   :  { %v2393_v9 = vadd.f32 %v2392_v8, %v2380_v5 }
 0x1f5   :  { %v2394_v60 = vpop.f32.mrf.mxu2 }
 0x22c   :  { %v2405_v10 = vpop.f32.mrf.mxu3 }
 0x22d   :  { %v2406_v28 = vadd.f32 %v2405_v10, %v2393_v9 }
 0x22f   :  { %v2414_v11 = vand.u32 2147483647, %v2406_v28  ;;  %2409 = vst [vmem:[#allocation12] sm:$0xff] %v2406_v28  ;;  %v2411_v22 = vmax.f32 %v2406_v28, 0.0  ;;  %v2412_v23 = vmul.f32 %v2410_v17, %v2406_v28 }
 0x230   :  { %2460 = dma.vmem_to_hbm [thread:$0]  %s2456_s27, 128, %s2458_s30, [#allocation4]  }
 0x231   :  { %v2415_v12 = vsub.f32 0.0, %v2414_v11  ;;  %v2413_v26 = vsub.f32 %v2411_v22, %v2412_v23 }
 0x233   :  { %v2416_v13 = vmul.f32 1.442695, %v2415_v12 }
 0x234   :  { %v2407_v14 = vpop.f32.mrf.mxu3 }
 0x235   :  { %3938 = vpow2.f32 %v2416_v13 }
 0x23b   :  { %v3939_v15 = vpop.eup %3938 }
 0x23c   :  { %v2418_v29 = vadd.f32 1.0, %v3939_v15  ;;  %v2421_v35 = vmul.f32 -0.5, %v3939_v15  ;;  %v2424_v24 = vand.u32 2147483647, %v3939_v15 }
 0x23e   :  { %3940 = vlog2.f32 %v2418_v29  ;;  %v2422_v20 = vadd.f32 1.0, %v2421_v35  ;;  %vm2425_vm2 = vcmp.lt.f32.partialorder %v2424_v24, 0.0004427343 }
 0x240   :  { %v2423_v21 = vmul.f32 %v3939_v15, %v2422_v20 }
 0x244   :  { %v3941_v16 = vpop.eup %3940 }
 0x245   :  { %v2420_v25 = vmul.f32 0.6931472, %v3941_v16 }
 0x247   :  { %v2426_v27 = vsel %vm2425_vm2, %v2423_v21, %v2420_v25 }
 0x248   :  { %v2427_v31 = vadd.f32 %v2426_v27, %v2413_v26 }
 0x24a   :  { %v2438_v32 = vsel %vm2437_vm3, %v2427_v31, 0.0 }
 0x24b   :  { %2439 = vadd.xlane.f32.xlu0 %v2438_v32 }
 0x2be   :  { %v2440_v49 = vpop.xlane.xlu0 %2439 }
 0x2bf   :  { %v2441_v34 = vrot.slane %v2440_v49, 4 }
 0x2c1   :  { %v2442_v36 = vadd.f32 %v2441_v34, %v2440_v49 }
 0x2c3   :  { %v2443_v37 = vrot.slane %v2442_v36, 2 }
 0x2c5   :  { %v2444_v46 = vadd.f32 %v2443_v37, %v2442_v36 }
 0x2c7   :  { %v2445_v52 = vrot.slane %v2444_v46, 1 }
 0x2c9   :  { %v2446_v50 = vadd.f32 %v2445_v52, %v2444_v46 }
 0x2cb   :  { %3924 = vpush %v2446_v50 }
 0x2fc   :  { %s3925_s11 = spop %3924 }
 0x2fd   :  { %2449 = sst [smem:[#allocation13]] %s3925_s11 }
 0x2fe   :  { %2469 = dma.smem_to_hbm %s4118_s12, 16, %s2467_s10, [#allocation5]  }
 0x2ff   :  { %4104 = dma.done.wait [#allocation4], 128  }
 0x300   :  { %4105 = vsyncadd [#allocation4], 4294967168 }
 0x301   :  { %4106 = dma.done.wait [#allocation5], 16  }
 0x302   :  { %4107 = vsyncadd [#allocation5], 4294967280 }
 0x303   :  { %2478 = sfence }
 0x304   :  { %2479 = vsyncpa [#allocation3], 1 }
 0x305   :  { %2480 = vsyncpa [#allocation7], 1 }
 0x306   :  { %2481 = vsyncpa [#allocation10], 1 }
 0x307   :  { %2482 = vsyncpa [#allocation4], 1 }
 0x308   :  { %2483 = vsyncpa [#allocation5], 1 }

</bundles_post_ra>
